<compile_context>
chip_gen: v7x
topology: tpu7x:2x2x1
jax: 0.10.0
libtpu: 0.0.40
codegen_flags: <defaults>
</compile_context>

<pallas_src>
import functools

import jax
import jax.numpy as jnp
from jax.experimental import pallas as pl
from jax.experimental.pallas import tpu as pltpu

NUM_CLASSES_LIST_PER_CATEGORY = [
    [4, 2, 2, 3, 2],
    [4, 6, 3, 8, 4, 3, 4, 5, 9, 2],
    [13, 2, 2, 2, 2, 2, 2, 3, 2],
    [7, 3, 3, 3, 6, 3, 2, 2],
    [12, 4, 2, 7, 2, 3, 6, 4, 4, 6],
]

FEAT_IN = 1024   # base_model channel dim (fixed by Linear(1024, 256))
HID = 256
FEAT_OUT = 128
PAD = 128        # lane-padded width per attribute head
NEG_INF = -1e30
BN_EPS = 1e-5


# ------------------------------ Fused kernel -------------------------------- #
def _fused_kernel(n_heads,
                  x_ref, w1_ref, b1_ref, w2_ref, b2_ref, w3_ref, b3_ref,
                  wh_ref, bh_ref, out_ref):
    # GAP over spatial (axis 1) in f32.
    x = x_ref[...]                                        # (B, H*W, C) f32
    g = jnp.mean(x, axis=1)                               # (B, C)

    # Layer 1: Linear(1024,256) with BN folded in; bf16 MXU inputs, f32 acc.
    h = jnp.dot(g.astype(jnp.bfloat16), w1_ref[...],
                preferred_element_type=jnp.float32) + b1_ref[...]
    h = jnp.maximum(h, 0.0)
    # Layer 2: Linear(256,256) with BN folded in.
    h = jnp.dot(h, w2_ref[...], preferred_element_type=jnp.float32) + b2_ref[...]
    h = jnp.maximum(h, 0.0)
    # Layer 3: Linear(256,128) + ReLU.
    h = jnp.dot(h, w3_ref[...], preferred_element_type=jnp.float32) + b3_ref[...]
    h = jnp.maximum(h, 0.0)                               # (B, 128)

    # All attribute heads as one wide matmul: (B,128) @ (128, n_heads*128).
    logits = jnp.dot(h, wh_ref[...],
                     preferred_element_type=jnp.float32) + bh_ref[...]

    # Per-head softmax over each 128-lane segment (padded lanes carry -1e30
    # bias, so exp underflows them to exactly 0).  Static loop, n_heads <= 10.
    segs = []
    for hd in range(n_heads):
        s = logits[:, hd * PAD:(hd + 1) * PAD]
        m = jnp.max(s, axis=-1, keepdims=True)
        e = jnp.exp(s - m)
        inv = pl.reciprocal(jnp.sum(e, axis=-1, keepdims=True), approx=True)
        segs.append(e * inv)
    out_ref[...] = jnp.concatenate(segs, axis=-1)         # lane-dense store


# -------------------------------- Wrapper ------------------------------------ #
def multi_output_forward(x_nhwc, kparams, category_idx):
    """x_nhwc: (B, H, W, 1024) float32 features from the (identity) base model."""
    B, H, W, C = x_nhwc.shape
    assert C == FEAT_IN
    nc_list = NUM_CLASSES_LIST_PER_CATEGORY[category_idx]
    n_heads = len(nc_list)

    x = x_nhwc.reshape(B, H * W, C)                       # no batch padding

    vmem_full = pl.BlockSpec(memory_space=pltpu.MemorySpace.VMEM)

    probs = pl.pallas_call(
        functools.partial(_fused_kernel, n_heads),
        out_shape=jax.ShapeDtypeStruct((B, n_heads * PAD), jnp.float32),
        in_specs=[vmem_full] * 9,
        out_specs=vmem_full,
    )(x,
      kparams["w1"], kparams["b1"],
      kparams["w2"], kparams["b2"],
      kparams["w3"], kparams["b3"],
      kparams["wh"], kparams["bh"])

    # Slice each head's true class count out of the lane-padded output.
    return [probs[:, i * PAD:i * PAD + nc] for i, nc in enumerate(nc_list)]


# --------------------------- Parameter construction -------------------------- #
def init_params(key, category_idx):
    """Raw (un-folded) parameters, matching the PyTorch module in eval mode."""
    nc_list = NUM_CLASSES_LIST_PER_CATEGORY[category_idx]
    n_heads = len(nc_list)
    keys = jax.random.split(key, 5 + n_heads)

    def lin(k, fan_in, fan_out):
        kw, kb = jax.random.split(k)
        lim = 1.0 / jnp.sqrt(float(fan_in))
        w = jax.random.uniform(kw, (fan_in, fan_out), jnp.float32, -lim, lim)
        b = jax.random.uniform(kb, (1, fan_out), jnp.float32, -lim, lim)
        return w, b

    def bn(k, n):
        k1, k2, k3, k4 = jax.random.split(k, 4)
        gamma = 1.0 + 0.1 * jax.random.normal(k1, (1, n), jnp.float32)
        beta = 0.1 * jax.random.normal(k2, (1, n), jnp.float32)
        mean = 0.1 * jax.random.normal(k3, (1, n), jnp.float32)
        var = 1.0 + 0.1 * jnp.abs(jax.random.normal(k4, (1, n), jnp.float32))
        scale = gamma / jnp.sqrt(var + BN_EPS)      # eval-mode BN as per-channel
        shift = beta - mean * scale                 # scale/shift
        return scale, shift

    w1, b1 = lin(keys[0], FEAT_IN, HID)
    s1, t1 = bn(keys[1], HID)
    w2, b2 = lin(keys[2], HID, HID)
    s2, t2 = bn(keys[3], HID)
    w3, b3 = lin(keys[4], HID, FEAT_OUT)

    head_raw = []
    for i, nc in enumerate(nc_list):
        w, b = lin(keys[5 + i], FEAT_OUT, nc)
        head_raw.append((w, b.reshape(nc)))

    raw = dict(w1=w1, b1=b1, s1=s1, t1=t1,
               w2=w2, b2=b2, s2=s2, t2=t2,
               w3=w3, b3=b3)
    return raw, head_raw


def fold_params(raw, head_raw, category_idx):
    """One-time host-side prep: fold eval BN into linears, cast w1 to bf16,
    concatenate all attribute heads into one wide (lane-padded) weight."""
    nc_list = NUM_CLASSES_LIST_PER_CATEGORY[category_idx]
    n_heads = len(nc_list)

    w1f = (raw["w1"] * raw["s1"]).astype(jnp.bfloat16)    # BN1 folded, bf16 MXU
    b1f = raw["b1"] * raw["s1"] + raw["t1"]
    w2f = raw["w2"] * raw["s2"]                           # BN2 folded
    b2f = raw["b2"] * raw["s2"] + raw["t2"]

    wh = jnp.zeros((FEAT_OUT, n_heads * PAD), jnp.float32)
    bh = jnp.full((1, n_heads * PAD), NEG_INF, jnp.float32)
    for i, (w, b) in enumerate(head_raw):
        nc = w.shape[1]
        wh = wh.at[:, i * PAD:i * PAD + nc].set(w)
        bh = bh.at[0, i * PAD:i * PAD + nc].set(b)

    return dict(w1=w1f, b1=b1f, w2=w2f, b2=b2f,
                w3=raw["w3"], b3=raw["b3"], wh=wh, bh=bh)


# ---------------------------- Plain-JAX reference ---------------------------- #
def reference_forward(x_nhwc, raw, head_raw):
    g = jnp.mean(x_nhwc, axis=(1, 2))
    h = jnp.maximum((g @ raw["w1"] + raw["b1"]) * raw["s1"] + raw["t1"], 0.0)
    h = jnp.maximum((h @ raw["w2"] + raw["b2"]) * raw["s2"] + raw["t2"], 0.0)
    h = jnp.maximum(h @ raw["w3"] + raw["b3"], 0.0)
    return [jax.nn.softmax(h @ w + b, axis=1) for (w, b) in head_raw]


if __name__ == "__main__":
    B, Hs, Ws = 2, 4, 4
    category_idx = 0

    key = jax.random.PRNGKey(0)
    k_x, k_p = jax.random.split(key)
    # Stand-in for base_model(x): identity -> NHWC features (B, H, W, 1024).
    x_feats = jax.random.normal(k_x, (B, Hs, Ws, FEAT_IN), jnp.float32)
    raw, head_raw = init_params(k_p, category_idx)
    kparams = fold_params(raw, head_raw, category_idx)

    outs = multi_output_forward(x_feats, kparams, category_idx)
    outs = [jax.block_until_ready(o) for o in outs]

    refs = reference_forward(x_feats, raw, head_raw)
    # Tolerance relaxed vs pure-f32: bf16 first-layer matmul + approx reciprocal
    # in the softmax denominator introduce ~1e-3 absolute error on probabilities.
    for o, r, nc in zip(outs, refs, NUM_CLASSES_LIST_PER_CATEGORY[category_idx]):
        assert o.shape == (B, nc), (o.shape, (B, nc))
        assert jnp.allclose(o, r, atol=5e-3, rtol=5e-3)

    print("KERNEL_OK")
</pallas_src>

<mosaic_0001>
module attributes {stable_mosaic.version = 11 : i64} {
  func.func @_fused_kernel(%arg0: memref<2x16x1024xf32, #tpu.memory_space<vmem>>, %arg1: memref<1024x256xbf16, #tpu.memory_space<vmem>>, %arg2: memref<1x256xf32, #tpu.memory_space<vmem>>, %arg3: memref<256x256xf32, #tpu.memory_space<vmem>>, %arg4: memref<1x256xf32, #tpu.memory_space<vmem>>, %arg5: memref<256x128xf32, #tpu.memory_space<vmem>>, %arg6: memref<1x128xf32, #tpu.memory_space<vmem>>, %arg7: memref<128x640xf32, #tpu.memory_space<vmem>>, %arg8: memref<1x640xf32, #tpu.memory_space<vmem>>, %arg9: memref<2x640xf32, #tpu.memory_space<vmem>>) attributes {dimension_semantics = [], scalar_prefetch = 0 : i64, scratch_operands = 0 : i64, tpu.core_type = #tpu.core_type<tc>} {
    %c0 = arith.constant 0 : index
    %c0_0 = arith.constant 0 : index
    %c0_1 = arith.constant 0 : index
    %0 = vector.load %arg0[%c0, %c0_0, %c0_1] : memref<2x16x1024xf32, #tpu.memory_space<vmem>>, vector<2x16x1024xf32>
    %cst = arith.constant dense<0.000000e+00> : vector<2x1024xf32>
    %1 = vector.multi_reduction <add>, %0, %cst [1] : vector<2x16x1024xf32> to vector<2x1024xf32>
    %cst_2 = arith.constant 1.600000e+01 : f32
    %2 = vector.broadcast %cst_2 : f32 to vector<2x1024xf32>
    %3 = arith.divf %1, %2 : vector<2x1024xf32>
    %4 = arith.truncf %3 : vector<2x1024xf32> to vector<2x1024xbf16>
    %c0_3 = arith.constant 0 : index
    %c0_4 = arith.constant 0 : index
    %5 = vector.load %arg1[%c0_3, %c0_4] : memref<1024x256xbf16, #tpu.memory_space<vmem>>, vector<1024x256xbf16>
    %cst_5 = arith.constant dense<0.000000e+00> : vector<2x256xf32>
    %6 = tpu.matmul %4, %5, %cst_5 {dimension_numbers = #tpu.dot_dimension_numbers<[1], [0], [0], [1], [0, 0, 1, 1], [], []>} : vector<2x1024xbf16>, vector<1024x256xbf16>, vector<2x256xf32> -> vector<2x256xf32>
    %c0_6 = arith.constant 0 : index
    %c0_7 = arith.constant 0 : index
    %7 = vector.load %arg2[%c0_6, %c0_7] : memref<1x256xf32, #tpu.memory_space<vmem>>, vector<1x256xf32>
    %8 = vector.broadcast %7 : vector<1x256xf32> to vector<2x256xf32>
    %9 = arith.addf %6, %8 : vector<2x256xf32>
    %cst_8 = arith.constant 0.000000e+00 : f32
    %10 = vector.broadcast %cst_8 : f32 to vector<2x256xf32>
    %11 = arith.maximumf %9, %10 : vector<2x256xf32>
    %c0_9 = arith.constant 0 : index
    %c0_10 = arith.constant 0 : index
    %12 = vector.load %arg3[%c0_9, %c0_10] : memref<256x256xf32, #tpu.memory_space<vmem>>, vector<256x256xf32>
    %cst_11 = arith.constant dense<0.000000e+00> : vector<2x256xf32>
    %13 = tpu.matmul %11, %12, %cst_11 {dimension_numbers = #tpu.dot_dimension_numbers<[1], [0], [0], [1], [0, 0, 1, 1], [], []>} : vector<2x256xf32>, vector<256x256xf32>, vector<2x256xf32> -> vector<2x256xf32>
    %c0_12 = arith.constant 0 : index
    %c0_13 = arith.constant 0 : index
    %14 = vector.load %arg4[%c0_12, %c0_13] : memref<1x256xf32, #tpu.memory_space<vmem>>, vector<1x256xf32>
    %15 = vector.broadcast %14 : vector<1x256xf32> to vector<2x256xf32>
    %16 = arith.addf %13, %15 : vector<2x256xf32>
    %cst_14 = arith.constant 0.000000e+00 : f32
    %17 = vector.broadcast %cst_14 : f32 to vector<2x256xf32>
    %18 = arith.maximumf %16, %17 : vector<2x256xf32>
    %c0_15 = arith.constant 0 : index
    %c0_16 = arith.constant 0 : index
    %19 = vector.load %arg5[%c0_15, %c0_16] : memref<256x128xf32, #tpu.memory_space<vmem>>, vector<256x128xf32>
    %cst_17 = arith.constant dense<0.000000e+00> : vector<2x128xf32>
    %20 = tpu.matmul %18, %19, %cst_17 {dimension_numbers = #tpu.dot_dimension_numbers<[1], [0], [0], [1], [0, 0, 1, 1], [], []>} : vector<2x256xf32>, vector<256x128xf32>, vector<2x128xf32> -> vector<2x128xf32>
    %c0_18 = arith.constant 0 : index
    %c0_19 = arith.constant 0 : index
    %21 = vector.load %arg6[%c0_18, %c0_19] : memref<1x128xf32, #tpu.memory_space<vmem>>, vector<1x128xf32>
    %22 = vector.broadcast %21 : vector<1x128xf32> to vector<2x128xf32>
    %23 = arith.addf %20, %22 : vector<2x128xf32>
    %cst_20 = arith.constant 0.000000e+00 : f32
    %24 = vector.broadcast %cst_20 : f32 to vector<2x128xf32>
    %25 = arith.maximumf %23, %24 : vector<2x128xf32>
    %c0_21 = arith.constant 0 : index
    %c0_22 = arith.constant 0 : index
    %26 = vector.load %arg7[%c0_21, %c0_22] : memref<128x640xf32, #tpu.memory_space<vmem>>, vector<128x640xf32>
    %cst_23 = arith.constant dense<0.000000e+00> : vector<2x640xf32>
    %27 = tpu.matmul %25, %26, %cst_23 {dimension_numbers = #tpu.dot_dimension_numbers<[1], [0], [0], [1], [0, 0, 1, 1], [], []>} : vector<2x128xf32>, vector<128x640xf32>, vector<2x640xf32> -> vector<2x640xf32>
    %c0_24 = arith.constant 0 : index
    %c0_25 = arith.constant 0 : index
    %28 = vector.load %arg8[%c0_24, %c0_25] : memref<1x640xf32, #tpu.memory_space<vmem>>, vector<1x640xf32>
    %29 = vector.broadcast %28 : vector<1x640xf32> to vector<2x640xf32>
    %30 = arith.addf %27, %29 : vector<2x640xf32>
    %31 = vector.extract_strided_slice %30 {offsets = [0, 0], sizes = [2, 128], strides = [1, 1]} : vector<2x640xf32> to vector<2x128xf32>
    %cst_26 = arith.constant dense<0xFF800000> : vector<2xf32>
    %32 = vector.multi_reduction <maximumf>, %31, %cst_26 [1] : vector<2x128xf32> to vector<2xf32>
    %33 = vector.shape_cast %32 : vector<2xf32> to vector<2x1xf32>
    %34 = vector.broadcast %33 : vector<2x1xf32> to vector<2x128xf32>
    %35 = arith.subf %31, %34 : vector<2x128xf32>
    %36 = math.exp %35 : vector<2x128xf32>
    %cst_27 = arith.constant dense<0.000000e+00> : vector<2xf32>
    %37 = vector.multi_reduction <add>, %36, %cst_27 [1] : vector<2x128xf32> to vector<2xf32>
    %38 = vector.shape_cast %37 : vector<2xf32> to vector<2x1xf32>
    %39 = tpu.reciprocal %38 {approx = true} : vector<2x1xf32> -> vector<2x1xf32>
    %40 = vector.broadcast %39 : vector<2x1xf32> to vector<2x128xf32>
    %41 = arith.mulf %36, %40 : vector<2x128xf32>
    %42 = vector.extract_strided_slice %30 {offsets = [0, 128], sizes = [2, 128], strides = [1, 1]} : vector<2x640xf32> to vector<2x128xf32>
    %cst_28 = arith.constant dense<0xFF800000> : vector<2xf32>
    %43 = vector.multi_reduction <maximumf>, %42, %cst_28 [1] : vector<2x128xf32> to vector<2xf32>
    %44 = vector.shape_cast %43 : vector<2xf32> to vector<2x1xf32>
    %45 = vector.broadcast %44 : vector<2x1xf32> to vector<2x128xf32>
    %46 = arith.subf %42, %45 : vector<2x128xf32>
    %47 = math.exp %46 : vector<2x128xf32>
    %cst_29 = arith.constant dense<0.000000e+00> : vector<2xf32>
    %48 = vector.multi_reduction <add>, %47, %cst_29 [1] : vector<2x128xf32> to vector<2xf32>
    %49 = vector.shape_cast %48 : vector<2xf32> to vector<2x1xf32>
    %50 = tpu.reciprocal %49 {approx = true} : vector<2x1xf32> -> vector<2x1xf32>
    %51 = vector.broadcast %50 : vector<2x1xf32> to vector<2x128xf32>
    %52 = arith.mulf %47, %51 : vector<2x128xf32>
    %53 = vector.extract_strided_slice %30 {offsets = [0, 256], sizes = [2, 128], strides = [1, 1]} : vector<2x640xf32> to vector<2x128xf32>
    %cst_30 = arith.constant dense<0xFF800000> : vector<2xf32>
    %54 = vector.multi_reduction <maximumf>, %53, %cst_30 [1] : vector<2x128xf32> to vector<2xf32>
    %55 = vector.shape_cast %54 : vector<2xf32> to vector<2x1xf32>
    %56 = vector.broadcast %55 : vector<2x1xf32> to vector<2x128xf32>
    %57 = arith.subf %53, %56 : vector<2x128xf32>
    %58 = math.exp %57 : vector<2x128xf32>
    %cst_31 = arith.constant dense<0.000000e+00> : vector<2xf32>
    %59 = vector.multi_reduction <add>, %58, %cst_31 [1] : vector<2x128xf32> to vector<2xf32>
    %60 = vector.shape_cast %59 : vector<2xf32> to vector<2x1xf32>
    %61 = tpu.reciprocal %60 {approx = true} : vector<2x1xf32> -> vector<2x1xf32>
    %62 = vector.broadcast %61 : vector<2x1xf32> to vector<2x128xf32>
    %63 = arith.mulf %58, %62 : vector<2x128xf32>
    %64 = vector.extract_strided_slice %30 {offsets = [0, 384], sizes = [2, 128], strides = [1, 1]} : vector<2x640xf32> to vector<2x128xf32>
    %cst_32 = arith.constant dense<0xFF800000> : vector<2xf32>
    %65 = vector.multi_reduction <maximumf>, %64, %cst_32 [1] : vector<2x128xf32> to vector<2xf32>
    %66 = vector.shape_cast %65 : vector<2xf32> to vector<2x1xf32>
    %67 = vector.broadcast %66 : vector<2x1xf32> to vector<2x128xf32>
    %68 = arith.subf %64, %67 : vector<2x128xf32>
    %69 = math.exp %68 : vector<2x128xf32>
    %cst_33 = arith.constant dense<0.000000e+00> : vector<2xf32>
    %70 = vector.multi_reduction <add>, %69, %cst_33 [1] : vector<2x128xf32> to vector<2xf32>
    %71 = vector.shape_cast %70 : vector<2xf32> to vector<2x1xf32>
    %72 = tpu.reciprocal %71 {approx = true} : vector<2x1xf32> -> vector<2x1xf32>
    %73 = vector.broadcast %72 : vector<2x1xf32> to vector<2x128xf32>
    %74 = arith.mulf %69, %73 : vector<2x128xf32>
    %75 = vector.extract_strided_slice %30 {offsets = [0, 512], sizes = [2, 128], strides = [1, 1]} : vector<2x640xf32> to vector<2x128xf32>
    %cst_34 = arith.constant dense<0xFF800000> : vector<2xf32>
    %76 = vector.multi_reduction <maximumf>, %75, %cst_34 [1] : vector<2x128xf32> to vector<2xf32>
    %77 = vector.shape_cast %76 : vector<2xf32> to vector<2x1xf32>
    %78 = vector.broadcast %77 : vector<2x1xf32> to vector<2x128xf32>
    %79 = arith.subf %75, %78 : vector<2x128xf32>
    %80 = math.exp %79 : vector<2x128xf32>
    %cst_35 = arith.constant dense<0.000000e+00> : vector<2xf32>
    %81 = vector.multi_reduction <add>, %80, %cst_35 [1] : vector<2x128xf32> to vector<2xf32>
    %82 = vector.shape_cast %81 : vector<2xf32> to vector<2x1xf32>
    %83 = tpu.reciprocal %82 {approx = true} : vector<2x1xf32> -> vector<2x1xf32>
    %84 = vector.broadcast %83 : vector<2x1xf32> to vector<2x128xf32>
    %85 = arith.mulf %80, %84 : vector<2x128xf32>
    %86 = tpu.concatenate %41, %52, %63, %74, %85 in 1 : vector<2x128xf32>, vector<2x128xf32>, vector<2x128xf32>, vector<2x128xf32>, vector<2x128xf32> -> vector<2x640xf32>
    %c0_36 = arith.constant 0 : index
    %c0_37 = arith.constant 0 : index
    %87 = vector.load %arg9[%c0_36, %c0_37] : memref<2x640xf32, #tpu.memory_space<vmem>>, vector<2x640xf32>
    tpu.vector_store %arg9[%c0_36, %c0_37], %86 {strides = array<i32>} : memref<2x640xf32, #tpu.memory_space<vmem>>, vector<2x640xf32>,
    return
  }
}

</mosaic_0001>

<bundles_post_ra>
// kernel: tpu_custom_call.1
= control target key start
LH: loop header
LB: loop body
LE: loop exit
PB: predicated region body
PF: predicated region fallthrough
CT: control target
= control target key end

     0   :  { %14 = vsyncpa [#allocation3], 0  ;;  %s2944_s0 = inlined_call_operand.hbm [shape: f32[2,16,1024], index: 0, kind: input, shape index: {}]   ;;  %s2945_s1 = inlined_call_operand.hbm [shape: bf16[1024,256], index: 1, kind: input, shape index: {}]   ;;  %s2946_s2 = inlined_call_operand.vmem [shape: f32[1,256], index: 2, kind: input, shape index: {}]   ;;  %s2947_s3 = inlined_call_operand.hbm [shape: f32[256,256], index: 3, kind: input, shape index: {}]   ;;  %s2948_s4 = inlined_call_operand.vmem [shape: f32[1,256], index: 4, kind: input, shape index: {}]   ;;  %s2949_s5 = inlined_call_operand.hbm [shape: f32[256,128], index: 5, kind: input, shape index: {}]   ;;  %s2950_s6 = inlined_call_operand.vmem [shape: f32[1,128], index: 6, kind: input, shape index: {}]   ;;  %s2951_s7 = inlined_call_operand.hbm [shape: f32[128,640], index: 7, kind: input, shape index: {}]   ;;  %s2952_s8 = inlined_call_operand.vmem [shape: f32[1,640], index: 8, kind: input, shape index: {}]   ;;  %s2953_s9 = inlined_call_operand.hbm [shape: f32[2,640], index: 9, kind: output, shape index: {}]  }
   0x1   :  { %15 = vsyncpa [#allocation6], 0 }
   0x2   :  { %16 = vsyncpa [#allocation9], 0 }
   0x3   :  { %17 = vsyncpa [#allocation4], 0  ;;  %s2748_s30 = smov [#allocation5]   ;;  %s2608_s13 = scalar_lea.hbm %s2945_s1, 16384 }
   0x4   :  { %s35_s10 = sshll.u32 %s2748_s30, 4  ;;  %p2609_p0 = scmp.ne.s32.totalorder %s2945_s1, %s2608_s13  ;;  %s36_s10 = int_to_ptr.vmem [resolvable:$true] %s35_s10 }
   0x5   :  { %p2612_p1 = scmp.lt.u32.totalorder %s2608_s13, %s2945_s1 }
   0x7   :  { %p2614_p2 = pnand %p2612_p1, %p2609_p0 }
   0x9   :  { %2617 = shalt.err (!%p2614_p2)
}
   0xa   :  { %s2618_s18 = scalar_lea.vmem %s36_s10, 16384  ;;  %p2623_p4 = scmp.lt.s32.totalorder %s36_s10, %s36_s10 }
   0xb   :  { %p2619_p3 = scmp.ne.s32.totalorder %s36_s10, %s2618_s18  ;;  %p2624_p5 = scmp.lt.s32.totalorder %s2618_s18, %s2618_s18 }
   0xd   :  { %p2625_p6 = por %p2624_p5, %p2623_p4 }
   0xf   :  { %p2626_p7 = pnand %p2625_p6, %p2619_p3 }
  0x11   :  { %2629 = shalt.err (!%p2626_p7)
}
  0x12   :  { %s2749_s19 = smov 128   ;;  %s2750_s20 = smov 8  }
  0x13   :  { %41 = dma.hbm_to_vmem [thread:$0]  %s2945_s1, 16384, %s36_s10, [#allocation6], %s2749_s19, %s2749_s19, %s2750_s20  }
  0x14   :  { %s2751_s23 = smov [#allocation8]   ;;  %s2752_s25 = smov [#allocation2]  }
  0x15   :  { %s63_s24 = sshll.u32 %s2751_s23, 4  ;;  %s23_s26 = sshll.u32 %s2752_s25, 4  ;;  %s64_s24 = int_to_ptr.vmem [resolvable:$true] %s63_s24  ;;  %s24_s26 = int_to_ptr.vmem [resolvable:$true] %s23_s26 }
  0x16   :  { %s2630_s29 = scalar_lea.hbm %s2949_s5, 4096 }
  0x17   :  { %p2631_p8 = scmp.ne.s32.totalorder %s2949_s5, %s2630_s29  ;;  %p2634_p9 = scmp.lt.u32.totalorder %s2630_s29, %s2949_s5 }
  0x19   :  { %p2636_p10 = pnand %p2634_p9, %p2631_p8 }
  0x1b   :  { %2639 = shalt.err (!%p2636_p10)
}
  0x1c   :  { %s2640_s1 = scalar_lea.vmem %s64_s24, 4096  ;;  %p2645_p12 = scmp.lt.s32.totalorder %s64_s24, %s64_s24 }
  0x1d   :  { %p2641_p11 = scmp.ne.s32.totalorder %s64_s24, %s2640_s1  ;;  %p2646_p13 = scmp.lt.s32.totalorder %s2640_s1, %s2640_s1 }
  0x1f   :  { %p2647_p0 = por %p2646_p13, %p2645_p12 }
  0x21   :  { %p2648_p1 = pnand %p2647_p0, %p2641_p11 }
  0x23   :  { %2651 = shalt.err (!%p2648_p1)
}
  0x24   :  { %69 = dma.hbm_to_vmem [thread:$0]  %s2949_s5, 4096, %s64_s24, [#allocation9], %s2749_s19, %s2749_s19, %s2750_s20  }
  0x25   :  { %s2652_s17 = scalar_lea.hbm %s2944_s0, 4096 }
  0x26   :  { %p2653_p2 = scmp.ne.s32.totalorder %s2944_s0, %s2652_s17  ;;  %p2656_p3 = scmp.lt.u32.totalorder %s2652_s17, %s2944_s0 }
  0x28   :  { %p2658_p4 = pnand %p2656_p3, %p2653_p2 }
  0x2a   :  { %2661 = shalt.err (!%p2658_p4)
}
  0x2b   :  { %s2662_s25 = scalar_lea.vmem %s24_s26, 4096  ;;  %p2667_p6 = scmp.lt.s32.totalorder %s24_s26, %s24_s26 }
  0x2c   :  { %p2663_p5 = scmp.ne.s32.totalorder %s24_s26, %s2662_s25  ;;  %p2668_p7 = scmp.lt.s32.totalorder %s2662_s25, %s2662_s25 }
  0x2e   :  { %p2669_p8 = por %p2668_p7, %p2667_p6 }
  0x30   :  { %p2670_p9 = pnand %p2669_p8, %p2663_p5 }
  0x32   :  { %2673 = shalt.err (!%p2670_p9)
}
  0x33   :  { %s2753_s5 = smov 1024   ;;  %s2754_s19 = smov 64  }
  0x34   :  { %29 = dma.hbm_to_vmem [thread:$0]  %s2944_s0, 4096, %s24_s26, [#allocation3], %s2753_s5, %s2753_s5, %s2754_s19  }
  0x35   :  { %s2755_s27 = smov [#allocation7]   ;;  %s2674_s11 = scalar_lea.hbm %s2947_s3, 8192 }
  0x36   :  { %s49_s28 = sshll.u32 %s2755_s27, 4  ;;  %p2675_p10 = scmp.ne.s32.totalorder %s2947_s3, %s2674_s11  ;;  %s50_s28 = int_to_ptr.vmem [resolvable:$true] %s49_s28 }
  0x37   :  { %p2678_p11 = scmp.lt.u32.totalorder %s2674_s11, %s2947_s3 }
  0x39   :  { %p2680_p12 = pnand %p2678_p11, %p2675_p10 }
  0x3b   :  { %2683 = shalt.err (!%p2680_p12)
}
  0x3c   :  { %s2684_s14 = scalar_lea.vmem %s50_s28, 8192  ;;  %p2689_p0 = scmp.lt.s32.totalorder %s50_s28, %s50_s28 }
  0x3d   :  { %p2685_p13 = scmp.ne.s32.totalorder %s50_s28, %s2684_s14  ;;  %p2690_p1 = scmp.lt.s32.totalorder %s2684_s14, %s2684_s14 }
  0x3f   :  { %p2691_p2 = por %p2690_p1, %p2689_p0 }
  0x41   :  { %p2692_p3 = pnand %p2691_p2, %p2685_p13 }
  0x43   :  { %2695 = shalt.err (!%p2692_p3)
}
  0x44   :  { %s2756_s0 = smov 256   ;;  %s2757_s26 = smov 16  }
  0x45   :  { %55 = dma.hbm_to_vmem [thread:$0]  %s2947_s3, 8192, %s50_s28, [#allocation6], %s2756_s0, %s2756_s0, %s2757_s26  }
  0x46   :  { %s2758_s17 = smov [#allocation10]   ;;  %s2696_s23 = scalar_lea.hbm %s2951_s7, 10240 }
  0x47   :  { %s77_s18 = sshll.u32 %s2758_s17, 4  ;;  %p2697_p4 = scmp.ne.s32.totalorder %s2951_s7, %s2696_s23  ;;  %s78_s18 = int_to_ptr.vmem [resolvable:$true] %s77_s18 }
  0x48   :  { %p2700_p5 = scmp.lt.u32.totalorder %s2696_s23, %s2951_s7 }
  0x4a   :  { %p2702_p6 = pnand %p2700_p5, %p2697_p4 }
  0x4c   :  { %2705 = shalt.err (!%p2702_p6)
}
  0x4d   :  { %s2706_s24 = scalar_lea.vmem %s78_s18, 10240  ;;  %p2711_p8 = scmp.lt.s32.totalorder %s78_s18, %s78_s18 }
  0x4e   :  { %p2707_p7 = scmp.ne.s32.totalorder %s78_s18, %s2706_s24  ;;  %p2712_p9 = scmp.lt.s32.totalorder %s2706_s24, %s2706_s24 }
  0x50   :  { %p2713_p10 = por %p2712_p9, %p2711_p8 }
  0x52   :  { %p2714_p11 = pnand %p2713_p10, %p2707_p7 }
  0x54   :  { %2717 = shalt.err (!%p2714_p11)
}
  0x55   :  { %s2759_s3 = smov 640   ;;  %s2760_s27 = smov 40  }
  0x56   :  { %83 = dma.hbm_to_vmem [thread:$0]  %s2951_s7, 10240, %s78_s18, [#allocation9], %s2759_s3, %s2759_s3, %s2760_s27  }
  0x57   :  { %2740 = dma.done.wait [#allocation3], 4096  }
  0x58   :  { %2741 = vsyncadd [#allocation3], 4294963200 }
  0x59   :  { %2742 = dma.done.wait [#allocation6], 24576  }
  0x5a   :  { %2743 = vsyncadd [#allocation6], 4294942720 }
  0x5b   :  { %2744 = dma.done.wait [#allocation9], 14336  }
  0x5c   :  { %2745 = vsyncadd [#allocation9], 4294952960  ;;  %v2396_v0 = vld [vmem:[#allocation5 + $0x104] ss:$8 sps:$4 sm:$0xff]   ;;  %v2398_v1 = vld [vmem:[#allocation5 + $0x100] ss:$8 sps:$4 sm:$0xff]  }
  0x5d   :  { %1156 = vmatprep.subr.bf16.mxu0 %v2396_v0  ;;  %v2399_v2 = vld [vmem:[#allocation5 + $0x114] ss:$8 sps:$4 sm:$0xff]   ;;  %v2401_v3 = vld [vmem:[#allocation5 + $0x110] ss:$8 sps:$4 sm:$0xff]   ;;  %v2402_v4 = vld [vmem:[#allocation5 + $0x124] ss:$8 sps:$4 sm:$0xff]  }
  0x5e   :  { %1157 = vmatpush1.bf16.msra.mxu0 %v2398_v1  ;;  %v2404_v5 = vld [vmem:[#allocation5 + $0x120] ss:$8 sps:$4 sm:$0xff]   ;;  %v2405_v6 = vld [vmem:[#allocation5 + $0x134] ss:$8 sps:$4 sm:$0xff]   ;;  %v2407_v7 = vld [vmem:[#allocation5 + $0x130] ss:$8 sps:$4 sm:$0xff]  }
  0x5f   :  { %1158 = vmatprep.subr.bf16.mxu0 %v2399_v2  ;;  %v2408_v8 = vld [vmem:[#allocation5 + $0x144] ss:$8 sps:$4 sm:$0xff]   ;;  %v2410_v9 = vld [vmem:[#allocation5 + $0x140] ss:$8 sps:$4 sm:$0xff]   ;;  %v2411_v10 = vld [vmem:[#allocation5 + $0x154] ss:$8 sps:$4 sm:$0xff]  }
  0x60   :  { %v2413_v11 = vld [vmem:[#allocation5 + $0x150] ss:$8 sps:$4 sm:$0xff]   ;;  %v2414_v12 = vld [vmem:[#allocation5 + $0x164] ss:$8 sps:$4 sm:$0xff]   ;;  %v2416_v18 = vld [vmem:[#allocation5 + $0x160] ss:$8 sps:$4 sm:$0xff]  }
  0x61   :  { %v104_v13 = vld [vmem:[#allocation2 + $0x18] sm:$0xff]  ;;  %v103_v22 = vld [vmem:[#allocation2 + $0x10] sm:$0xff]  ;;  %v2420_v33 = vld [vmem:[#allocation5 + $0x184] ss:$8 sps:$4 sm:$0xff]   ;;  %vm450_vm0 = vcmask 1041409   ;;  %vm2763_vm1 = vmmov 0  }
  0x62   :  { %1159 = vmatpush1.bf16.msra.mxu0 %v2401_v3  ;;  %v112_v14 = vld [vmem:[#allocation2 + $0x58] sm:$0xff]  ;;  %v111_v23 = vld [vmem:[#allocation2 + $0x50] sm:$0xff]  ;;  %v2422_v40 = vld [vmem:[#allocation5 + $0x180] ss:$8 sps:$4 sm:$0xff]   ;;  %vm1859_vm2 = vcmask 1041408  }
  0x63   :  { %1160 = vmatprep.subr.bf16.mxu0 %v2402_v4  ;;  %v120_v15 = vld [vmem:[#allocation2 + $0x98] sm:$0xff]  ;;  %v154_v17 = vadd.f32 %v112_v14, %v104_v13  ;;  %v119_v24 = vld [vmem:[#allocation2 + $0x90] sm:$0xff]  ;;  %v147_v27 = vadd.f32 %v111_v23, %v103_v22  ;;  %v2426_v52 = vld [vmem:[#allocation5 + $0x1a4] ss:$8 sps:$4 sm:$0xff]  }
  0x64   :  { %v128_v16 = vld [vmem:[#allocation2 + $0xd8] sm:$0xff]  ;;  %v127_v26 = vld [vmem:[#allocation2 + $0xd0] sm:$0xff]  ;;  %v2428_v57 = vld [vmem:[#allocation5 + $0x1a0] ss:$8 sps:$4 sm:$0xff]  }
  0x65   :  { %v2417_v19 = vld [vmem:[#allocation5 + $0x174] ss:$8 sps:$4 sm:$0xff]   ;;  %v210_v20 = vadd.f32 %v128_v16, %v120_v15  ;;  %v155_v21 = vrot.slane %v154_v17, 4  ;;  %v203_v29 = vadd.f32 %v127_v26, %v119_v24  ;;  %v2419_v30 = vld [vmem:[#allocation5 + $0x170] ss:$8 sps:$4 sm:$0xff]   ;;  %v148_v32 = vrot.slane %v147_v27, 4 }
  0x66   :  { %1161 = vmatpush1.bf16.msra.mxu0 %v2404_v5  ;;  %v2423_v43 = vld [vmem:[#allocation5 + $0x194] ss:$8 sps:$4 sm:$0xff]   ;;  %v2425_v49 = vld [vmem:[#allocation5 + $0x190] ss:$8 sps:$4 sm:$0xff]   ;;  %v2432_v1 = vld [vmem:[#allocation5 + $0x1c4] ss:$8 sps:$4 sm:$0xff]  }
  0x67   :  { %1162 = vmatprep.subr.bf16.mxu0 %v2405_v6  ;;  %v211_v25 = vrot.slane %v210_v20, 4  ;;  %v156_v28 = vadd.f32 %v155_v21, %v154_v17  ;;  %v204_v35 = vrot.slane %v203_v29, 4  ;;  %v149_v37 = vadd.f32 %v148_v32, %v147_v27  ;;  %v2429_v60 = vld [vmem:[#allocation5 + $0x1b4] ss:$8 sps:$4 sm:$0xff]   ;;  %v2431_v0 = vld [vmem:[#allocation5 + $0x1b0] ss:$8 sps:$4 sm:$0xff]  }
  0x68   :  { %v2489_v5 = vld [vmem:[#allocation5 + $0x4] ss:$8 sps:$4 sm:$0xff]   ;;  %v2491_v6 = vld [vmem:[#allocation5] ss:$8 sps:$4 sm:$0xff]  }
  0x69   :  { %v212_v31 = vadd.f32 %v211_v25, %v210_v20  ;;  %v157_v34 = vrot.slane %v156_v28, 2  ;;  %v205_v39 = vadd.f32 %v204_v35, %v203_v29  ;;  %v150_v42 = vrot.slane %v149_v37, 2  ;;  %1115 = vmatprep.subr.bf16.mxu1 %v2489_v5  ;;  %v106_v13 = vld [vmem:[#allocation2 + $0x28] sm:$0xff]  ;;  %v2441_v29 = vld [vmem:[#allocation5 + $0x1f4] ss:$8 sps:$4 sm:$0xff]  }
  0x6a   :  { %1163 = vmatpush1.bf16.msra.mxu0 %v2407_v7  ;;  %v2434_v7 = vld [vmem:[#allocation5 + $0x1c0] ss:$8 sps:$4 sm:$0xff]   ;;  %1116 = vmatpush1.bf16.msra.mxu1 %v2491_v6  ;;  %v2438_v20 = vld [vmem:[#allocation5 + $0x1e4] ss:$8 sps:$4 sm:$0xff]   ;;  %v2453_v6 = vld [vmem:[#allocation5 + $0x230] ss:$8 sps:$4 sm:$0xff]  }
  0x6b   :  { %1164 = vmatprep.subr.bf16.mxu0 %v2408_v8  ;;  %v213_v36 = vrot.slane %v212_v31, 2  ;;  %v158_v38 = vadd.f32 %v157_v34, %v156_v28  ;;  %v206_v45 = vrot.slane %v205_v39, 2  ;;  %v151_v48 = vadd.f32 %v150_v42, %v149_v37  ;;  %v2435_v8 = vld [vmem:[#allocation5 + $0x1d4] ss:$8 sps:$4 sm:$0xff]   ;;  %v114_v14 = vld [vmem:[#allocation2 + $0x68] sm:$0xff] }
  0x6c   :  { %v122_v15 = vld [vmem:[#allocation2 + $0xa8] sm:$0xff]  ;;  %v168_v17 = vadd.f32 %v114_v14, %v106_v13  ;;  %v2507_v34 = vld [vmem:[#allocation5 + $0x34] ss:$8 sps:$4 sm:$0xff]   ;;  %v121_v14 = vld [vmem:[#allocation2 + $0xa0] sm:$0xff] }
  0x6d   :  { %v214_v41 = vadd.f32 %v213_v36, %v212_v31  ;;  %v159_v44 = vrot.slane %v158_v38, 1  ;;  %v207_v51 = vadd.f32 %v206_v45, %v205_v39  ;;  %v152_v56 = vrot.slane %v151_v48, 1  ;;  %v130_v16 = vld [vmem:[#allocation2 + $0xe8] sm:$0xff]  ;;  %v2509_v36 = vld [vmem:[#allocation5 + $0x30] ss:$8 sps:$4 sm:$0xff]  }
  0x6e   :  { %1165 = vmatpush1.bf16.msra.mxu0 %v2410_v9  ;;  %v169_v23 = vrot.slane %v168_v17, 4  ;;  %v2501_v25 = vld [vmem:[#allocation5 + $0x24] ss:$8 sps:$4 sm:$0xff]   ;;  %v2503_v27 = vld [vmem:[#allocation5 + $0x20] ss:$8 sps:$4 sm:$0xff]  }
  0x6f   :  { %1166 = vmatprep.subr.bf16.mxu0 %v2411_v10  ;;  %v215_v46 = vrot.slane %v214_v41, 1  ;;  %v160_v47 = vadd.f32 %v159_v44, %v158_v38  ;;  %v208_v59 = vrot.slane %v207_v51, 1  ;;  %v153_v63 = vadd.f32 %v152_v56, %v151_v48  ;;  %v2440_v28 = vld [vmem:[#allocation5 + $0x1e0] ss:$8 sps:$4 sm:$0xff]   ;;  %v2513_v39 = vld [vmem:[#allocation5 + $0x44] ss:$8 sps:$4 sm:$0xff]  }
  0x70   :  { %v170_v26 = vadd.f32 %v169_v23, %v168_v17  ;;  %v2446_v44 = vld [vmem:[#allocation5 + $0x204] ss:$8 sps:$4 sm:$0xff]   ;;  %v2444_v48 = vld [vmem:[#allocation5 + $0x200] ss:$8 sps:$4 sm:$0xff]   ;;  %v2461_v13 = vld [vmem:[#allocation5 + $0x254] ss:$8 sps:$4 sm:$0xff]  }
  0x71   :  { %v216_v50 = vadd.f32 %v215_v46, %v214_v41  ;;  %v249_v53 = vmul.f32 0.0625, %v160_v47  ;;  %v209_v3 = vadd.f32 %v208_v59, %v207_v51  ;;  %v248_v9 = vmul.f32 0.0625, %v153_v63  ;;  %v2519_v47 = vld [vmem:[#allocation5 + $0x54] ss:$8 sps:$4 sm:$0xff]   ;;  %v2452_v59 = vld [vmem:[#allocation5 + $0x224] ss:$8 sps:$4 sm:$0xff]  }
  0x72   :  { %1167 = vmatpush1.bf16.msra.mxu0 %v2413_v11  ;;  %v2495_v11 = vld [vmem:[#allocation5 + $0x14] ss:$8 sps:$4 sm:$0xff]   ;;  %v2537_v5 = vld [vmem:[#allocation5 + $0x84] ss:$8 sps:$4 sm:$0xff]  }
  0x73   :  { %1168 = vmatprep.subr.bf16.mxu0 %v2414_v12  ;;  %v257_v54 = vmul.f32 0.0625, %v216_v50  ;;  %v265_v55 = vpack.c.bf16 %v249_v53, %v249_v53  ;;  %v256_v10 = vmul.f32 0.0625, %v209_v3  ;;  %v2497_v12 = vld [vmem:[#allocation5 + $0x10] ss:$8 sps:$4 sm:$0xff]   ;;  %1117 = vmatprep.subr.bf16.mxu1 %v2495_v11  ;;  %v264_v21 = vpack.c.bf16 %v248_v9, %v248_v9  ;;  %v2449_v51 = vld [vmem:[#allocation5 + $0x214] ss:$8 sps:$4 sm:$0xff]  }
  0x74   :  { %1118 = vmatpush1.bf16.msra.mxu1 %v2497_v12  ;;  %v2521_v53 = vld [vmem:[#allocation5 + $0x50] ss:$8 sps:$4 sm:$0xff]   ;;  %v2531_v63 = vld [vmem:[#allocation5 + $0x74] ss:$8 sps:$4 sm:$0xff]   ;;  %v105_v11 = vld [vmem:[#allocation2 + $0x20] sm:$0xff] }
  0x75   :  { %v273_v58 = vpack.c.bf16 %v257_v54, %v257_v54  ;;  %v437_v61 = vunpack.c.l.b16 %v265_v55  ;;  %v272_v22 = vpack.c.bf16 %v256_v10, %v256_v10  ;;  %1119 = vmatprep.subr.bf16.mxu1 %v2501_v25  ;;  %v436_v31 = vunpack.c.l.b16 %v264_v21  ;;  %v2525_v55 = vld [vmem:[#allocation5 + $0x64] ss:$8 sps:$4 sm:$0xff]   ;;  %v2543_v9 = vld [vmem:[#allocation5 + $0x94] ss:$8 sps:$4 sm:$0xff]   ;;  %v2456_v10 = vld [vmem:[#allocation5 + $0x240] ss:$8 sps:$4 sm:$0xff]  }
  0x76   :  { %1169 = vmatpush1.bf16.msra.mxu0 %v2416_v18  ;;  %v224_v18 = vadd.f32 %v130_v16, %v122_v15  ;;  %v113_v12 = vld [vmem:[#allocation2 + $0x60] sm:$0xff]  ;;  %v2545_v16 = vld [vmem:[#allocation5 + $0x90] ss:$8 sps:$4 sm:$0xff]   ;;  %v2555_v23 = vld [vmem:[#allocation5 + $0xb4] ss:$8 sps:$4 sm:$0xff]  }
  0x77   :  { %1170 = vmatprep.subr.bf16.mxu0 %v2417_v19  ;;  %v445_v62 = vunpack.c.l.b16 %v273_v58  ;;  %v2437_v19 = vld [vmem:[#allocation5 + $0x1d0] ss:$8 sps:$4 sm:$0xff]   ;;  %v444_v32 = vunpack.c.l.b16 %v272_v22  ;;  %v129_v15 = vld [vmem:[#allocation2 + $0xe0] sm:$0xff]  ;;  %v2467_v25 = vld [vmem:[#allocation5 + $0x274] ss:$8 sps:$4 sm:$0xff]  }
  0x78   :  { %v225_v24 = vrot.slane %v224_v18, 4  ;;  %1120 = vmatpush1.bf16.msra.mxu1 %v2503_v27  ;;  %v2549_v17 = vld [vmem:[#allocation5 + $0xa4] ss:$8 sps:$4 sm:$0xff]   ;;  %v217_v21 = vadd.f32 %v129_v15, %v121_v14  ;;  %v2551_v22 = vld [vmem:[#allocation5 + $0xa0] ss:$8 sps:$4 sm:$0xff]  }
  0x79   :  { %v454_v2 = vsel %vm450_vm0, %v445_v62, %v437_v61  ;;  %1121 = vmatprep.subr.bf16.mxu1 %v2507_v34  ;;  %v453_v41 = vsel %vm450_vm0, %v444_v32, %v436_v31  ;;  %v2527_v61 = vld [vmem:[#allocation5 + $0x60] ss:$8 sps:$4 sm:$0xff]  }
  0x7a   :  { %1171 = vmatpush1.bf16.msra.mxu0 %v2419_v30  ;;  %v462_v4 = vpack.c.b16 %v454_v2, %v454_v2  ;;  %v226_v30 = vadd.f32 %v225_v24, %v224_v18  ;;  %v2459_v18 = vld [vmem:[#allocation5 + $0x250] ss:$8 sps:$4 sm:$0xff]   ;;  %v2462_v24 = vld [vmem:[#allocation5 + $0x260] ss:$8 sps:$4 sm:$0xff]   ;;  %v218_v27 = vrot.slane %v217_v21, 4 }
  0x7b   :  { %1172 = vmatprep.subr.bf16.mxu0 %v2420_v33  ;;  %v171_v33 = vrot.slane %v170_v26, 2  ;;  %v2563_v31 = vld [vmem:[#allocation5 + $0xc0] ss:$8 sps:$4 sm:$0xff]  }
  0x7c   :  { %1188 = vmatprep.mubr.bf16.mxu0 %v462_v4  ;;  %v227_v35 = vrot.slane %v226_v30, 2  ;;  %1122 = vmatpush1.bf16.msra.mxu1 %v2509_v36  ;;  %v2533_v4 = vld [vmem:[#allocation5 + $0x70] ss:$8 sps:$4 sm:$0xff]   ;;  %v102_v32 = vld [vmem:[#allocation2 + $0x8] sm:$0xff]  ;;  %v2567_v36 = vld [vmem:[#allocation5 + $0xd4] ss:$8 sps:$4 sm:$0xff]  }
  0x7d   :  { %v172_v37 = vadd.f32 %v171_v33, %v170_v26  ;;  %1123 = vmatprep.subr.bf16.mxu1 %v2513_v39  ;;  %v2470_v33 = vld [vmem:[#allocation5 + $0x284] ss:$8 sps:$4 sm:$0xff]  }
  0x7e   :  { %1173 = vmatpush1.bf16.msra.mxu0 %v2422_v40  ;;  %v228_v38 = vadd.f32 %v227_v35, %v226_v30  ;;  %v2443_v40 = vld [vmem:[#allocation5 + $0x1f0] ss:$8 sps:$4 sm:$0xff]   ;;  %v219_v35 = vadd.f32 %v218_v27, %v217_v21  ;;  %v126_v39 = vld [vmem:[#allocation2 + $0xc8] sm:$0xff] }
  0x7f   :  { %1174 = vmatprep.subr.bf16.mxu0 %v2423_v43  ;;  %v173_v42 = vrot.slane %v172_v37, 1  ;;  %v2515_v43 = vld [vmem:[#allocation5 + $0x40] ss:$8 sps:$4 sm:$0xff]   ;;  %v2465_v30 = vld [vmem:[#allocation5 + $0x270] ss:$8 sps:$4 sm:$0xff]  }
  0x80   :  { %v229_v45 = vrot.slane %v228_v38, 1  ;;  %1124 = vmatpush1.bf16.msra.mxu1 %v2515_v43  ;;  %v109_v43 = vld [vmem:[#allocation2 + $0x40] sm:$0xff] }
  0x81   :  { %v174_v46 = vadd.f32 %v173_v42, %v172_v37  ;;  %1125 = vmatprep.subr.bf16.mxu1 %v2519_v47  ;;  %v110_v37 = vld [vmem:[#allocation2 + $0x48] sm:$0xff]  ;;  %v101_v42 = vld [vmem:[#allocation2] sm:$0xff] }
  0x82   :  { %1175 = vmatpush1.bf16.msra.mxu0 %v2425_v49  ;;  %v461_v49 = vpack.c.b16 %v453_v41, %v453_v41  ;;  %v230_v50 = vadd.f32 %v229_v45, %v228_v38  ;;  %v118_v38 = vld [vmem:[#allocation2 + $0x88] sm:$0xff]  ;;  %v125_v45 = vld [vmem:[#allocation2 + $0xc0] sm:$0xff] }
  0x83   :  { %1176 = vmatprep.subr.bf16.mxu0 %v2426_v52  ;;  %v251_v52 = vmul.f32 0.0625, %v174_v46  ;;  %v196_v41 = vadd.f32 %v126_v39, %v118_v38  ;;  %v133_v46 = vadd.f32 %v109_v43, %v101_v42 }
  0x84   :  { %v259_v54 = vmul.f32 0.0625, %v230_v50  ;;  %1126 = vmatpush1.bf16.msra.mxu1 %v2521_v53  ;;  %v108_v53 = vld [vmem:[#allocation2 + $0x38] sm:$0xff] }
  0x85   :  { %v267_v56 = vpack.c.bf16 %v251_v52, %v251_v52  ;;  %1127 = vmatprep.subr.bf16.mxu1 %v2525_v55  ;;  %v134_v52 = vrot.slane %v133_v46, 4  ;;  %v124_v55 = vld [vmem:[#allocation2 + $0xb8] sm:$0xff] }
  0x86   :  { %1177 = vmatpush1.bf16.msra.mxu0 %v2428_v57  ;;  %v2447_v57 = vld [vmem:[#allocation5 + $0x210] ss:$8 sps:$4 sm:$0xff]   ;;  %v275_v58 = vpack.c.bf16 %v259_v54, %v259_v54 }
  0x87   :  { %1178 = vmatprep.subr.bf16.mxu0 %v2429_v60  ;;  %v439_v60 = vunpack.c.l.b16 %v267_v56  ;;  %v116_v54 = vld [vmem:[#allocation2 + $0x78] sm:$0xff]  ;;  %v2468_v56 = vld [vmem:[#allocation5 + $0x280] ss:$8 sps:$4 sm:$0xff]  }
  0x88   :  { %v447_v62 = vunpack.c.l.b16 %v275_v58  ;;  %1128 = vmatpush1.bf16.msra.mxu1 %v2527_v61  ;;  %v132_v61 = vld [vmem:[#allocation2 + $0xf8] sm:$0xff] }
  0x89   :  { %1129 = vmatprep.subr.bf16.mxu1 %v2531_v63  ;;  %v2473_v63 = vld [vmem:[#allocation5 + $0x294] ss:$8 sps:$4 sm:$0xff]  }
  0x8a   :  { %1179 = vmatpush1.bf16.msra.mxu0 %v2431_v0  ;;  %v2450_v0 = vld [vmem:[#allocation5 + $0x220] ss:$8 sps:$4 sm:$0xff]   ;;  %v456_v2 = vsel %vm450_vm0, %v447_v62, %v439_v60  ;;  %v182_v62 = vadd.f32 %v116_v54, %v108_v53 }
  0x8b   :  { %1180 = vmatprep.subr.bf16.mxu0 %v2432_v1  ;;  %v2455_v1 = vld [vmem:[#allocation5 + $0x234] ss:$8 sps:$4 sm:$0xff]   ;;  %v464_v3 = vpack.c.b16 %v456_v2, %v456_v2  ;;  %v238_v2 = vadd.f32 %v132_v61, %v124_v55  ;;  %v1282_v54 = vld [vmem:[#allocation7 + $0x8] sm:$0xff]  ;;  %v1281_v61 = vld [vmem:[#allocation7] sm:$0xff] }
  0x8c   :  { %1130 = vmatpush1.bf16.msra.mxu1 %v2533_v4  ;;  %v1284_v55 = vld [vmem:[#allocation7 + $0x18] sm:$0xff] }
  0x8d   :  { %1131 = vmatprep.subr.bf16.mxu1 %v2537_v5 }
  0x8e   :  { %1181 = vmatpush1.bf16.msra.mxu0 %v2434_v7  ;;  %v2458_v7 = vld [vmem:[#allocation5 + $0x244] ss:$8 sps:$4 sm:$0xff]  }
  0x8f   :  { %1182 = vmatprep.subr.bf16.mxu0 %v2435_v8  ;;  %v2539_v8 = vld [vmem:[#allocation5 + $0x80] ss:$8 sps:$4 sm:$0xff]  }
  0x90   :  { %1132 = vmatpush1.bf16.msra.mxu1 %v2539_v8 }
  0x91   :  { %1133 = vmatprep.subr.bf16.mxu1 %v2543_v9 }
  0x92   :  { %1183 = vmatpush1.bf16.msra.mxu0 %v2437_v19  ;;  %v2464_v19 = vld [vmem:[#allocation5 + $0x264] ss:$8 sps:$4 sm:$0xff]  }
  0x93   :  { %1184 = vmatprep.subr.bf16.mxu0 %v2438_v20  ;;  %v161_v20 = vadd.f32 %v113_v12, %v105_v11  ;;  %v2471_v11 = vld [vmem:[#allocation5 + $0x290] ss:$8 sps:$4 sm:$0xff]   ;;  %v2575_v12 = vld [vmem:[#allocation5 + $0xe0] ss:$8 sps:$4 sm:$0xff]  }
  0x94   :  { %1134 = vmatpush1.bf16.msra.mxu1 %v2545_v16 }
  0x95   :  { %1135 = vmatprep.subr.bf16.mxu1 %v2549_v17  ;;  %v162_v26 = vrot.slane %v161_v20, 4  ;;  %v2476_v17 = vld [vmem:[#allocation5 + $0x2a4] ss:$8 sps:$4 sm:$0xff]  }
  0x96   :  { %1185 = vmatpush1.bf16.msra.mxu0 %v2440_v28  ;;  %v2557_v28 = vld [vmem:[#allocation5 + $0xb0] ss:$8 sps:$4 sm:$0xff]  }
  0x97   :  { %1186 = vmatprep.subr.bf16.mxu0 %v2441_v29  ;;  %v2561_v29 = vld [vmem:[#allocation5 + $0xc4] ss:$8 sps:$4 sm:$0xff]   ;;  %v163_v34 = vadd.f32 %v162_v26, %v161_v20 }
  0x98   :  { %1136 = vmatpush1.bf16.msra.mxu1 %v2551_v22 }
  0x99   :  { %1137 = vmatprep.subr.bf16.mxu1 %v2555_v23  ;;  %v164_v50 = vrot.slane %v163_v34, 2 }
  0x9a   :  { %1187 = vmatpush1.bf16.msra.mxu0 %v2443_v40  ;;  %v140_v40 = vadd.f32 %v110_v37, %v102_v32 }
  0x9b   :  { %1197 = vmatprep.subr.bf16.mxu0 %v2446_v44  ;;  %v117_v44 = vld [vmem:[#allocation2 + $0x80] sm:$0xff] }
  0x9c   :  { %1138 = vmatpush1.bf16.msra.mxu1 %v2557_v28  ;;  %v141_v47 = vrot.slane %v140_v40, 4 }
  0x9d   :  { %1189 = vmatmul.mubr.bf16.vlgmr.msra.gmra.mrb[0].mxu0 %v461_v49  ;;  %1139 = vmatprep.subr.bf16.mxu1 %v2561_v29  ;;  %v189_v49 = vadd.f32 %v125_v45, %v117_v44  ;;  %v2474_v29 = vld [vmem:[#allocation5 + $0x2a0] ss:$8 sps:$4 sm:$0xff]   ;;  %v2477_v45 = vld [vmem:[#allocation5 + $0x2b0] ss:$8 sps:$4 sm:$0xff]  }
  0x9e   :  { %1198 = vmatpush1.bf16.msra.mxu0 %v2444_v48  ;;  %1229 = vmatprep.mubr.bf16.mxu0 %v464_v3  ;;  %v197_v48 = vrot.slane %v196_v41, 4  ;;  %v142_v58 = vadd.f32 %v141_v47, %v140_v40 }
  0x9f   :  { %1199 = vmatprep.subr.bf16.mxu0 %v2449_v51  ;;  %v220_v51 = vrot.slane %v219_v35, 2  ;;  %v190_v60 = vrot.slane %v189_v49, 4 }
  0xa0   :  { %1140 = vmatpush1.bf16.msra.mxu1 %v2563_v31  ;;  %v143_v3 = vrot.slane %v142_v58, 2 }
  0xa1   :  { %1141 = vmatprep.subr.bf16.mxu1 %v2567_v36  ;;  %v191_v5 = vadd.f32 %v190_v60, %v189_v49  ;;  %v221_v8 = vadd.f32 %v220_v51, %v219_v35  ;;  %v2479_v35 = vld [vmem:[#allocation5 + $0x2b4] ss:$8 sps:$4 sm:$0xff]  }
  0xa2   :  { %1200 = vmatpush1.bf16.msra.mxu0 %v2447_v57  ;;  %v2569_v57 = vld [vmem:[#allocation5 + $0xd0] ss:$8 sps:$4 sm:$0xff]  }
  0xa3   :  { %1201 = vmatprep.subr.bf16.mxu0 %v2452_v59  ;;  %v198_v59 = vadd.f32 %v197_v48, %v196_v41  ;;  %v192_v15 = vrot.slane %v191_v5, 2  ;;  %v222_v26 = vrot.slane %v221_v8, 1 }
  0xa4   :  { %1142 = vmatpush1.bf16.msra.mxu1 %v2569_v57 }
  0xa5   :  { %v199_v4 = vrot.slane %v198_v59, 2  ;;  %v193_v23 = vadd.f32 %v192_v15, %v191_v5  ;;  %v1288_v5 = vld [vmem:[#allocation7 + $0x38] sm:$0xff]  ;;  %v1287_v15 = vld [vmem:[#allocation7 + $0x30] sm:$0xff] }
  0xa6   :  { %1202 = vmatpush1.bf16.msra.mxu0 %v2450_v0  ;;  %v2573_v0 = vld [vmem:[#allocation5 + $0xe4] ss:$8 sps:$4 sm:$0xff]  }
  0xa7   :  { %1203 = vmatprep.subr.bf16.mxu0 %v2455_v1  ;;  %v135_v1 = vadd.f32 %v134_v52, %v133_v46  ;;  %v200_v14 = vadd.f32 %v199_v4, %v198_v59  ;;  %1143 = vmatprep.subr.bf16.mxu1 %v2573_v0  ;;  %v223_v46 = vadd.f32 %v222_v26, %v221_v8  ;;  %v1286_v4 = vld [vmem:[#allocation7 + $0x28] sm:$0xff]  ;;  %v1289_v26 = vld [vmem:[#allocation7 + $0x40] sm:$0xff] }
  0xa8   :  { %1144 = vmatpush1.bf16.msra.mxu1 %v2575_v12 }
  0xa9   :  { %v136_v9 = vrot.slane %v135_v1, 2  ;;  %v201_v22 = vrot.slane %v200_v14, 1  ;;  %v258_v0 = vmul.f32 0.0625, %v223_v46 }
  0xaa   :  { %1204 = vmatpush1.bf16.msra.mxu0 %v2453_v6  ;;  %v183_v6 = vrot.slane %v182_v62, 4 }
  0xab   :  { %1205 = vmatprep.subr.bf16.mxu0 %v2458_v7  ;;  %v165_v7 = vadd.f32 %v164_v50, %v163_v34  ;;  %v202_v32 = vadd.f32 %v201_v22, %v200_v14  ;;  %v2482_v50 = vld [vmem:[#allocation5 + $0x2c4] ss:$8 sps:$4 sm:$0xff]  }
  0xac   :  { %v184_v16 = vadd.f32 %v183_v6, %v182_v62  ;;  %v1283_v62 = vld [vmem:[#allocation7 + $0x10] sm:$0xff]  ;;  %v1285_v14 = vld [vmem:[#allocation7 + $0x20] sm:$0xff] }
  0xad   :  { %v255_v39 = vmul.f32 0.0625, %v202_v32  ;;  %v2485_v6 = vld [vmem:[#allocation5 + $0x2d4] ss:$8 sps:$4 sm:$0xff]  }
  0xae   :  { %1206 = vmatpush1.bf16.msra.mxu0 %v2456_v10  ;;  %v239_v10 = vrot.slane %v238_v2, 4  ;;  %v1296_v32 = vld [vmem:[#allocation7 + $0x78] sm:$0xff] }
  0xaf   :  { %1207 = vmatprep.subr.bf16.mxu0 %v2461_v13  ;;  %v144_v13 = vadd.f32 %v143_v3, %v142_v58  ;;  %v271_v48 = vpack.c.bf16 %v255_v39, %v255_v39  ;;  %v2182_v3 = vpack.c.bf16 %v1284_v55, %v1282_v54  ;;  %v1295_v39 = vld [vmem:[#allocation7 + $0x70] sm:$0xff]  ;;  %v1304_v54 = vld [vmem:[#allocation7 + $0xb8] sm:$0xff] }
  0xb0   :  { %v240_v20 = vadd.f32 %v239_v10, %v238_v2  ;;  %v2506_v55 = vld [vmem:[#allocation5 + $0x314] ss:$8 sps:$4 sm:$0xff]  }
  0xb1   :  { %v145_v21 = vrot.slane %v144_v13, 1  ;;  %v443_v57 = vunpack.c.l.b16 %v271_v48 }
  0xb2   :  { %1208 = vmatpush1.bf16.msra.mxu0 %v2459_v18  ;;  %v2579_v18 = vld [vmem:[#allocation5 + $0xf4] ss:$8 sps:$4 sm:$0xff]   ;;  %v241_v28 = vrot.slane %v240_v20, 2 }
  0xb3   :  { %1209 = vmatprep.subr.bf16.mxu0 %v2464_v19  ;;  %v137_v19 = vadd.f32 %v136_v9, %v135_v1  ;;  %v146_v31 = vadd.f32 %v145_v21, %v144_v13  ;;  %1145 = vmatprep.subr.bf16.mxu1 %v2579_v18  ;;  %v2186_v13 = vpack.c.bf16 %v1288_v5, %v1286_v4  ;;  %v2488_v21 = vld [vmem:[#allocation5 + $0x2e4] ss:$8 sps:$4 sm:$0xff]   ;;  %v2510_v4 = vld [vmem:[#allocation5 + $0x320] ss:$8 sps:$4 sm:$0xff]  }
  0xb4   :  { %v242_v37 = vadd.f32 %v241_v28, %v240_v20  ;;  %v274_v18 = vpack.c.bf16 %v258_v0, %v258_v0  ;;  %v1292_v20 = vld [vmem:[#allocation7 + $0x58] sm:$0xff]  ;;  %v2486_v28 = vld [vmem:[#allocation5 + $0x2e0] ss:$8 sps:$4 sm:$0xff]  }
  0xb5   :  { %v138_v27 = vrot.slane %v137_v19, 1  ;;  %v247_v38 = vmul.f32 0.0625, %v146_v31  ;;  %v1294_v31 = vld [vmem:[#allocation7 + $0x68] sm:$0xff] }
  0xb6   :  { %1210 = vmatpush1.bf16.msra.mxu0 %v2462_v24  ;;  %v185_v24 = vrot.slane %v184_v16, 2  ;;  %v243_v44 = vrot.slane %v242_v37, 1  ;;  %v1310_v5 = vld [vmem:[#allocation7 + $0xe8] sm:$0xff] }
  0xb7   :  { %1211 = vmatprep.subr.bf16.mxu0 %v2467_v25  ;;  %v166_v25 = vrot.slane %v165_v7, 1  ;;  %v139_v36 = vadd.f32 %v138_v27, %v137_v19  ;;  %v263_v47 = vpack.c.bf16 %v247_v38, %v247_v38  ;;  %v1290_v19 = vld [vmem:[#allocation7 + $0x48] sm:$0xff]  ;;  %v1291_v27 = vld [vmem:[#allocation7 + $0x50] sm:$0xff]  ;;  %v1293_v38 = vld [vmem:[#allocation7 + $0x60] sm:$0xff] }
  0xb8   :  { %v186_v34 = vadd.f32 %v185_v24, %v184_v16  ;;  %v244_v53 = vadd.f32 %v243_v44, %v242_v37  ;;  %v2483_v16 = vld [vmem:[#allocation5 + $0x2d0] ss:$8 sps:$4 sm:$0xff]   ;;  %v2188_v24 = vpack.c.bf16 %v1287_v15, %v1285_v14  ;;  %v2194_v37 = vpack.c.bf16 %v1296_v32, %v1294_v31  ;;  %v2500_v44 = vld [vmem:[#allocation5 + $0x304] ss:$8 sps:$4 sm:$0xff]  }
  0xb9   :  { %v167_v42 = vadd.f32 %v166_v25, %v165_v7  ;;  %v246_v43 = vmul.f32 0.0625, %v139_v36  ;;  %v2190_v25 = vpack.c.bf16 %v1292_v20, %v1290_v19  ;;  %v2192_v36 = vpack.c.bf16 %v1291_v27, %v1289_v26  ;;  %v1316_v14 = vld [vmem:[#allocation7 + $0x118] sm:$0xff]  ;;  %v2524_v15 = vld [vmem:[#allocation5 + $0x344] ss:$8 sps:$4 sm:$0xff]   ;;  %v123_v26 = vld [vmem:[#allocation2 + $0xb0] sm:$0xff] }
  0xba   :  { %1212 = vmatpush1.bf16.msra.mxu0 %v2465_v30  ;;  %v2581_v30 = vld [vmem:[#allocation5 + $0xf0] ss:$8 sps:$4 sm:$0xff]   ;;  %v187_v41 = vrot.slane %v186_v34, 1  ;;  %v261_v9 = vmul.f32 0.0625, %v244_v53  ;;  %v2196_v46 = vpack.c.bf16 %v1295_v39, %v1293_v38  ;;  %v1302_v53 = vld [vmem:[#allocation7 + $0xa8] sm:$0xff]  ;;  %v1313_v20 = vld [vmem:[#allocation7 + $0x100] sm:$0xff] }
  0xbb   :  { %1213 = vmatprep.subr.bf16.mxu0 %v2470_v33  ;;  %v194_v33 = vrot.slane %v193_v23, 1  ;;  %1146 = vmatpush1.bf16.msra.mxu1 %v2581_v30  ;;  %v262_v51 = vpack.c.bf16 %v246_v43, %v246_v43  ;;  %v250_v59 = vmul.f32 0.0625, %v167_v42  ;;  %v446_v30 = vunpack.c.l.b16 %v274_v18  ;;  %v1298_v42 = vld [vmem:[#allocation7 + $0x88] sm:$0xff]  ;;  %v1300_v43 = vld [vmem:[#allocation7 + $0x98] sm:$0xff]  ;;  %v131_v27 = vld [vmem:[#allocation2 + $0xf0] sm:$0xff] }
  0xbc   :  { %v188_v52 = vadd.f32 %v187_v41, %v186_v34  ;;  %2183 = vmatprep.subr.bf16.mxu1 %v2182_v3  ;;  %v2198_v48 = vpack.c.bf16 %v1300_v43, %v1298_v42  ;;  %v1307_v3 = vld [vmem:[#allocation7 + $0xd0] sm:$0xff]  ;;  %v2534_v42 = vld [vmem:[#allocation5 + $0x360] ss:$8 sps:$4 sm:$0xff]  }
  0xbd   :  { %v195_v40 = vadd.f32 %v194_v33, %v193_v23  ;;  %v434_v60 = vunpack.c.l.b16 %v262_v51  ;;  %v277_v23 = vpack.c.bf16 %v261_v9, %v261_v9  ;;  %v2494_v33 = vld [vmem:[#allocation5 + $0x2f4] ss:$8 sps:$4 sm:$0xff]   ;;  %v2498_v51 = vld [vmem:[#allocation5 + $0x300] ss:$8 sps:$4 sm:$0xff]   ;;  %v2528_v32 = vld [vmem:[#allocation5 + $0x350] ss:$8 sps:$4 sm:$0xff]  }
  0xbe   :  { %1214 = vmatpush1.bf16.msra.mxu0 %v2468_v56  ;;  %v435_v56 = vunpack.c.l.b16 %v263_v47  ;;  %v253_v8 = vmul.f32 0.0625, %v188_v52  ;;  %v2530_v18 = vld [vmem:[#allocation5 + $0x354] ss:$8 sps:$4 sm:$0xff]  }
  0xbf   :  { %1215 = vmatprep.subr.bf16.mxu0 %v2473_v63  ;;  %v254_v49 = vmul.f32 0.0625, %v195_v40  ;;  %v2480_v63 = vld [vmem:[#allocation5 + $0x2c0] ss:$8 sps:$4 sm:$0xff]   ;;  %v2492_v40 = vld [vmem:[#allocation5 + $0x2f0] ss:$8 sps:$4 sm:$0xff]  }
  0xc0   :  { %v452_v1 = vsel %vm450_vm0, %v443_v57, %v435_v56  ;;  %v269_v22 = vpack.c.bf16 %v253_v8, %v253_v8  ;;  %v2202_v57 = vpack.c.bf16 %v1304_v54, %v1302_v53  ;;  %v1319_v31 = vld [vmem:[#allocation7 + $0x130] sm:$0xff] }
  0xc1   :  { %v270_v58 = vpack.c.bf16 %v254_v49, %v254_v49  ;;  %v460_v7 = vpack.c.b16 %v452_v1, %v452_v1  ;;  %v1297_v49 = vld [vmem:[#allocation7 + $0x80] sm:$0xff] }
  0xc2   :  { %1216 = vmatpush1.bf16.msra.mxu0 %v2471_v11  ;;  %v2184_v11 = vpack.c.bf16 %v1283_v62, %v1281_v61  ;;  %v441_v34 = vunpack.c.l.b16 %v269_v22  ;;  %v1306_v61 = vld [vmem:[#allocation7 + $0xc8] sm:$0xff]  ;;  %v1308_v62 = vld [vmem:[#allocation7 + $0xd8] sm:$0xff]  ;;  %v107_v22 = vld [vmem:[#allocation2 + $0x30] sm:$0xff] }
  0xc3   :  { %1217 = vmatprep.subr.bf16.mxu0 %v2476_v17  ;;  %v442_v2 = vunpack.c.l.b16 %v270_v58  ;;  %1147 = vmatprep.mubr.bf16.mxu1 %v460_v7  ;;  %v266_v17 = vpack.c.bf16 %v250_v59, %v250_v59  ;;  %v1301_v58 = vld [vmem:[#allocation7 + $0xa0] sm:$0xff]  ;;  %v1303_v59 = vld [vmem:[#allocation7 + $0xb0] sm:$0xff]  ;;  %v2206_v1 = vpack.c.bf16 %v1308_v62, %v1306_v61 }
  0xc4   :  { %v2204_v0 = vpack.c.bf16 %v1303_v59, %v1301_v58  ;;  %v2518_v7 = vld [vmem:[#allocation5 + $0x334] ss:$8 sps:$4 sm:$0xff]   ;;  %v2546_v62 = vld [vmem:[#allocation5 + $0x380] ss:$8 sps:$4 sm:$0xff]  }
  0xc5   :  { %v451_v10 = vsel %vm450_vm0, %v442_v2, %v434_v60  ;;  %v2504_v60 = vld [vmem:[#allocation5 + $0x310] ss:$8 sps:$4 sm:$0xff]   ;;  %v1305_v2 = vld [vmem:[#allocation7 + $0xc0] sm:$0xff] }
  0xc6   :  { %1218 = vmatpush1.bf16.msra.mxu0 %v2474_v29  ;;  %v459_v12 = vpack.c.b16 %v451_v10, %v451_v10  ;;  %v438_v29 = vunpack.c.l.b16 %v266_v17  ;;  %v2208_v8 = vpack.c.bf16 %v1307_v3, %v1305_v2  ;;  %v1309_v10 = vld [vmem:[#allocation7 + $0xe0] sm:$0xff]  ;;  %v1331_v61 = vld [vmem:[#allocation7 + $0x190] sm:$0xff] }
  0xc7   :  { %1219 = vmatprep.subr.bf16.mxu0 %v2479_v35  ;;  %v449_v35 = vunpack.c.l.b16 %v277_v23  ;;  %v1318_v23 = vld [vmem:[#allocation7 + $0x128] sm:$0xff]  ;;  %v2552_v3 = vld [vmem:[#allocation5 + $0x390] ss:$8 sps:$4 sm:$0xff]  }
  0xc8   :  { %1148 = vmatmul.mubr.bf16.vlgmr.msra.gmra.mrb[0].mxu1 %v459_v12  ;;  %v455_v41 = vsel %vm450_vm0, %v446_v30, %v438_v29  ;;  %v2516_v12 = vld [vmem:[#allocation5 + $0x330] ss:$8 sps:$4 sm:$0xff]   ;;  %v1317_v30 = vld [vmem:[#allocation7 + $0x120] sm:$0xff] }
  0xc9   :  { %2185 = vmatpush1.bf16.msra.mxu1 %v2184_v11  ;;  %v463_v47 = vpack.c.b16 %v455_v41, %v455_v41  ;;  %v1311_v11 = vld [vmem:[#allocation7 + $0xf0] sm:$0xff]  ;;  %v2220_v38 = vpack.c.bf16 %v1319_v31, %v1317_v30  ;;  %v1334_v30 = vld [vmem:[#allocation7 + $0x1a8] sm:$0xff]  ;;  %v1336_v31 = vld [vmem:[#allocation7 + $0x1b8] sm:$0xff] }
  0xca   :  { %1220 = vmatpush1.bf16.msra.mxu0 %v2477_v45  ;;  %2187 = vmatprep.subr.bf16.mxu1 %v2186_v13  ;;  %v458_v45 = vsel %vm450_vm0, %v449_v35, %v441_v34  ;;  %v1314_v13 = vld [vmem:[#allocation7 + $0x108] sm:$0xff]  ;;  %v2212_v17 = vpack.c.bf16 %v1311_v11, %v1309_v10  ;;  %v231_v34 = vadd.f32 %v131_v27, %v123_v26  ;;  %v1323_v41 = vld [vmem:[#allocation7 + $0x150] sm:$0xff] }
  0xcb   :  { %1221 = vmatprep.subr.bf16.mxu0 %v2482_v50  ;;  %v1299_v50 = vld [vmem:[#allocation7 + $0x90] sm:$0xff]  ;;  %v466_v52 = vpack.c.b16 %v458_v45, %v458_v45  ;;  %v2214_v19 = vpack.c.bf16 %v1316_v14, %v1314_v13  ;;  %v1322_v35 = vld [vmem:[#allocation7 + $0x148] sm:$0xff] }
  0xcc   :  { %v2200_v56 = vpack.c.bf16 %v1299_v50, %v1297_v49  ;;  %v1326_v45 = vld [vmem:[#allocation7 + $0x168] sm:$0xff]  ;;  %v1325_v50 = vld [vmem:[#allocation7 + $0x160] sm:$0xff]  ;;  %v2566_v10 = vld [vmem:[#allocation5 + $0x3b4] ss:$8 sps:$4 sm:$0xff]  }
  0xcd   :  { %2189 = vmatpush1.bf16.msra.mxu1 %v2188_v24  ;;  %v1320_v24 = vld [vmem:[#allocation7 + $0x138] sm:$0xff]  ;;  %v2572_v14 = vld [vmem:[#allocation5 + $0x3c4] ss:$8 sps:$4 sm:$0xff]  }
  0xce   :  { %1222 = vmatpush1.bf16.msra.mxu0 %v2480_v63  ;;  %2191 = vmatprep.subr.bf16.mxu1 %v2190_v25  ;;  %v2512_v63 = vld [vmem:[#allocation5 + $0x324] ss:$8 sps:$4 sm:$0xff]   ;;  %v115_v25 = vld [vmem:[#allocation2 + $0x70] sm:$0xff]  ;;  %v2218_v29 = vpack.c.bf16 %v1320_v24, %v1318_v23  ;;  %v2582_v23 = vld [vmem:[#allocation5 + $0x3e0] ss:$8 sps:$4 sm:$0xff]  }
  0xcf   :  { %1223 = vmatprep.subr.bf16.mxu0 %v2485_v6  ;;  %v1312_v6 = vld [vmem:[#allocation7 + $0xf8] sm:$0xff] }
  0xd0   :  { %v2210_v9 = vpack.c.bf16 %v1312_v6, %v1310_v5  ;;  %v2560_v6 = vld [vmem:[#allocation5 + $0x3a4] ss:$8 sps:$4 sm:$0xff]   ;;  %v2564_v11 = vld [vmem:[#allocation5 + $0x3b0] ss:$8 sps:$4 sm:$0xff]   ;;  %v2587_v26 = vld [vmem:[#allocation5 + $0x3f4] ss:$8 sps:$4 sm:$0xff]  }
  0xd1   :  { %2193 = vmatpush1.bf16.msra.mxu1 %v2192_v36  ;;  %v1324_v36 = vld [vmem:[#allocation7 + $0x158] sm:$0xff] }
  0xd2   :  { %1224 = vmatpush1.bf16.msra.mxu0 %v2483_v16  ;;  %2195 = vmatprep.subr.bf16.mxu1 %v2194_v37  ;;  %v2522_v16 = vld [vmem:[#allocation5 + $0x340] ss:$8 sps:$4 sm:$0xff]   ;;  %v2536_v37 = vld [vmem:[#allocation5 + $0x364] ss:$8 sps:$4 sm:$0xff]   ;;  %v2222_v39 = vpack.c.bf16 %v1324_v36, %v1322_v35  ;;  %v2585_v27 = vld [vmem:[#allocation5 + $0x3f0] ss:$8 sps:$4 sm:$0xff]  }
  0xd3   :  { %1225 = vmatprep.subr.bf16.mxu0 %v2488_v21  ;;  %v1315_v21 = vld [vmem:[#allocation7 + $0x110] sm:$0xff]  ;;  %v1338_v36 = vld [vmem:[#allocation7 + $0x1c8] sm:$0xff] }
  0xd5   :  { %2197 = vmatpush1.bf16.msra.mxu1 %v2196_v46  ;;  %v1328_v46 = vld [vmem:[#allocation7 + $0x178] sm:$0xff] }
  0xd6   :  { %1226 = vmatpush1.bf16.msra.mxu0 %v2486_v28  ;;  %2199 = vmatprep.subr.bf16.mxu1 %v2198_v48  ;;  %v2216_v28 = vpack.c.bf16 %v1315_v21, %v1313_v20  ;;  %v2226_v49 = vpack.c.bf16 %v1328_v46, %v1326_v45  ;;  %v1341_v45 = vld [vmem:[#allocation7 + $0x1e0] sm:$0xff]  ;;  %v1343_v46 = vld [vmem:[#allocation7 + $0x1f0] sm:$0xff] }
  0xd7   :  { %1227 = vmatprep.subr.bf16.mxu0 %v2494_v33  ;;  %v175_v33 = vadd.f32 %v115_v25, %v107_v22  ;;  %v2584_v22 = vld [vmem:[#allocation5 + $0x3e4] ss:$8 sps:$4 sm:$0xff]  }
  0xd9   :  { %2201 = vmatpush1.bf16.msra.mxu1 %v2200_v56  ;;  %v176_v43 = vrot.slane %v175_v33, 4  ;;  %v1332_v56 = vld [vmem:[#allocation7 + $0x198] sm:$0xff] }
  0xda   :  { %1228 = vmatpush1.bf16.msra.mxu0 %v2492_v40  ;;  %2203 = vmatprep.subr.bf16.mxu1 %v2202_v57  ;;  %v1321_v40 = vld [vmem:[#allocation7 + $0x140] sm:$0xff] }
  0xdb   :  { %1238 = vmatprep.subr.bf16.mxu0 %v2500_v44  ;;  %v232_v44 = vrot.slane %v231_v34, 4  ;;  %v2224_v48 = vpack.c.bf16 %v1323_v41, %v1321_v40  ;;  %v177_v53 = vadd.f32 %v176_v43, %v175_v33  ;;  %v2548_v57 = vld [vmem:[#allocation5 + $0x384] ss:$8 sps:$4 sm:$0xff]   ;;  %v1339_v40 = vld [vmem:[#allocation7 + $0x1d0] sm:$0xff]  ;;  %v1344_v43 = vld [vmem:[#allocation7 + $0x1f8] sm:$0xff] }
  0xdc   :  { %v1333_v33 = vld [vmem:[#allocation7 + $0x1a0] sm:$0xff] }
  0xdd   :  { %1230 = vmatmul.mubr.bf16.vlgmr.msra.gmra.mrb[0].mxu0 %v463_v47  ;;  %2205 = vmatpush1.bf16.msra.mxu1 %v2204_v0  ;;  %v2542_v47 = vld [vmem:[#allocation5 + $0x374] ss:$8 sps:$4 sm:$0xff]   ;;  %v233_v54 = vadd.f32 %v232_v44, %v231_v34 }
  0xde   :  { %1239 = vmatpush1.bf16.msra.mxu0 %v2498_v51  ;;  %1270 = vmatprep.mubr.bf16.mxu0 %v466_v52  ;;  %v1327_v51 = vld [vmem:[#allocation7 + $0x170] sm:$0xff] }
  0xdf   :  { %1240 = vmatprep.subr.bf16.mxu0 %v2506_v55  ;;  %2207 = vmatprep.subr.bf16.mxu1 %v2206_v1  ;;  %v2540_v52 = vld [vmem:[#allocation5 + $0x370] ss:$8 sps:$4 sm:$0xff]   ;;  %v1330_v55 = vld [vmem:[#allocation7 + $0x188] sm:$0xff]  ;;  %v2228_v58 = vpack.c.bf16 %v1327_v51, %v1325_v50  ;;  %v234_v0 = vrot.slane %v233_v54, 2  ;;  %v2554_v1 = vld [vmem:[#allocation5 + $0x394] ss:$8 sps:$4 sm:$0xff]  }
  0xe0   :  { %v2230_v59 = vpack.c.bf16 %v1332_v56, %v1330_v55  ;;  %v1335_v34 = vld [vmem:[#allocation7 + $0x1b0] sm:$0xff]  ;;  %v1430_v50 = vld [vmem:[#allocation8] sm:$0xff] }
  0xe1   :  { %2209 = vmatpush1.bf16.msra.mxu1 %v2208_v8  ;;  %v235_v5 = vadd.f32 %v234_v0, %v233_v54  ;;  %v2236_v35 = vpack.c.bf16 %v1335_v34, %v1333_v33  ;;  %v1449_v54 = vld [vmem:[#allocation8 + $0x98] sm:$0xff]  ;;  %v1435_v0 = vld [vmem:[#allocation8 + $0x28] sm:$0xff] }
  0xe2   :  { %1241 = vmatpush1.bf16.msra.mxu0 %v2504_v60  ;;  %2211 = vmatprep.subr.bf16.mxu1 %v2210_v9  ;;  %v1329_v60 = vld [vmem:[#allocation7 + $0x180] sm:$0xff] }
  0xe3   :  { %1242 = vmatprep.subr.bf16.mxu0 %v2512_v63  ;;  %v178_v63 = vrot.slane %v177_v53, 2  ;;  %v2232_v2 = vpack.c.bf16 %v1331_v61, %v1329_v60  ;;  %v236_v9 = vrot.slane %v235_v5, 1  ;;  %v1451_v60 = vld [vmem:[#allocation8 + $0xa8] sm:$0xff] }
  0xe5   :  { %2213 = vmatpush1.bf16.msra.mxu1 %v2212_v17  ;;  %v237_v13 = vadd.f32 %v236_v9, %v235_v5  ;;  %v1436_v5 = vld [vmem:[#allocation8 + $0x30] sm:$0xff] }
  0xe6   :  { %1243 = vmatpush1.bf16.msra.mxu0 %v2510_v4  ;;  %2215 = vmatprep.subr.bf16.mxu1 %v2214_v19  ;;  %v179_v4 = vadd.f32 %v178_v63, %v177_v53  ;;  %v2576_v19 = vld [vmem:[#allocation5 + $0x3d0] ss:$8 sps:$4 sm:$0xff]   ;;  %v1434_v63 = vld [vmem:[#allocation8 + $0x20] sm:$0xff] }
  0xe7   :  { %1244 = vmatprep.subr.bf16.mxu0 %v2518_v7  ;;  %v2558_v7 = vld [vmem:[#allocation5 + $0x3a0] ss:$8 sps:$4 sm:$0xff]   ;;  %v260_v17 = vmul.f32 0.0625, %v237_v13  ;;  %v1448_v53 = vld [vmem:[#allocation8 + $0x90] sm:$0xff] }
  0xe8   :  { %v180_v8 = vrot.slane %v179_v4, 1  ;;  %v2250_v56 = vpack.c.bf16 %v1449_v54, %v1448_v53  ;;  %v1456_v13 = vld [vmem:[#allocation8 + $0xd0] sm:$0xff]  ;;  %v1541_v53 = vld [vmem:[#allocation10 + $0x8] sm:$0xff] }
  0xe9   :  { %2217 = vmatpush1.bf16.msra.mxu1 %v2216_v28  ;;  %v276_v21 = vpack.c.bf16 %v260_v17, %v260_v17  ;;  %v1440_v17 = vld [vmem:[#allocation8 + $0x50] sm:$0xff] }
  0xea   :  { %1245 = vmatpush1.bf16.msra.mxu0 %v2516_v12  ;;  %2219 = vmatprep.subr.bf16.mxu1 %v2218_v29  ;;  %v181_v12 = vadd.f32 %v180_v8, %v179_v4  ;;  %v1455_v8 = vld [vmem:[#allocation8 + $0xc8] sm:$0xff]  ;;  %v1546_v54 = vld [vmem:[#allocation10 + $0x30] sm:$0xff] }
  0xeb   :  { %1246 = vmatprep.subr.bf16.mxu0 %v2524_v15  ;;  %v2570_v15 = vld [vmem:[#allocation5 + $0x3c0] ss:$8 sps:$4 sm:$0xff]   ;;  %v448_v25 = vunpack.c.l.b16 %v276_v21 }
  0xed   :  { %2221 = vmatpush1.bf16.msra.mxu1 %v2220_v38 }
  0xee   :  { %1247 = vmatpush1.bf16.msra.mxu0 %v2522_v16  ;;  %2223 = vmatprep.subr.bf16.mxu1 %v2222_v39  ;;  %v252_v16 = vmul.f32 0.0625, %v181_v12  ;;  %v1337_v39 = vld [vmem:[#allocation7 + $0x1c0] sm:$0xff]  ;;  %v1439_v12 = vld [vmem:[#allocation8 + $0x48] sm:$0xff] }
  0xef   :  { %1248 = vmatprep.subr.bf16.mxu0 %v2530_v18  ;;  %v2578_v18 = vld [vmem:[#allocation5 + $0x3d4] ss:$8 sps:$4 sm:$0xff]   ;;  %v2240_v41 = vpack.c.bf16 %v1339_v40, %v1337_v39 }
  0xf0   :  { %v268_v20 = vpack.c.bf16 %v252_v16, %v252_v16 }
  0xf1   :  { %2225 = vmatpush1.bf16.msra.mxu1 %v2224_v48  ;;  %v1446_v48 = vld [vmem:[#allocation8 + $0x80] sm:$0xff] }
  0xf2   :  { %1249 = vmatpush1.bf16.msra.mxu0 %v2528_v32  ;;  %2227 = vmatprep.subr.bf16.mxu1 %v2226_v49  ;;  %v440_v24 = vunpack.c.l.b16 %v268_v20  ;;  %v2234_v32 = vpack.c.bf16 %v1336_v31, %v1334_v30  ;;  %v1447_v49 = vld [vmem:[#allocation8 + $0x88] sm:$0xff]  ;;  %v406_v30 = vld [vmem:[%s2946_s2] sm:$0x3] }
  0xf3   :  { %1250 = vmatprep.subr.bf16.mxu0 %v2536_v37  ;;  %v1340_v37 = vld [vmem:[#allocation7 + $0x1d8] sm:$0xff]  ;;  %v2246_v51 = vpack.c.bf16 %v1447_v49, %v1446_v48  ;;  %v1459_v20 = vld [vmem:[#allocation8 + $0xe8] sm:$0xff] }
  0xf4   :  { %v457_v28 = vsel %vm450_vm0, %v448_v25, %v440_v24  ;;  %v2238_v38 = vpack.c.bf16 %v1340_v37, %v1338_v36  ;;  %v1461_v48 = vld [vmem:[#allocation8 + $0xf8] sm:$0xff] }
  0xf5   :  { %2229 = vmatpush1.bf16.msra.mxu1 %v2228_v58  ;;  %v465_v29 = vpack.c.b16 %v457_v28, %v457_v28  ;;  %v1433_v58 = vld [vmem:[#allocation8 + $0x18] sm:$0xff] }
  0xf6   :  { %1251 = vmatpush1.bf16.msra.mxu0 %v2534_v42  ;;  %2231 = vmatprep.subr.bf16.mxu1 %v2230_v59  ;;  %v1342_v42 = vld [vmem:[#allocation7 + $0x1e8] sm:$0xff]  ;;  %v1450_v59 = vld [vmem:[#allocation8 + $0xa0] sm:$0xff] }
  0xf7   :  { %1252 = vmatprep.subr.bf16.mxu0 %v2542_v47  ;;  %v2242_v44 = vpack.c.bf16 %v1344_v43, %v1342_v42  ;;  %v2244_v47 = vpack.c.bf16 %v1343_v46, %v1341_v45  ;;  %v1443_v45 = vld [vmem:[#allocation8 + $0x68] sm:$0xff] }
  0xf9   :  { %2233 = vmatpush1.bf16.msra.mxu1 %v2232_v2  ;;  %v1453_v2 = vld [vmem:[#allocation8 + $0xb8] sm:$0xff] }
  0xfa   :  { %1253 = vmatpush1.bf16.msra.mxu0 %v2540_v52  ;;  %2235 = vmatprep.subr.bf16.mxu1 %v2234_v32  ;;  %v1431_v52 = vld [vmem:[#allocation8 + $0x8] sm:$0xff] }
  0xfb   :  { %1254 = vmatprep.subr.bf16.mxu0 %v2548_v57  ;;  %v2248_v55 = vpack.c.bf16 %v1431_v52, %v1430_v50  ;;  %v1432_v57 = vld [vmem:[#allocation8 + $0x10] sm:$0xff] }
  0xfc   :  { %v2252_v61 = vpack.c.bf16 %v1433_v58, %v1432_v57  ;;  %v1444_v50 = vld [vmem:[#allocation8 + $0x70] sm:$0xff]  ;;  %v1545_v57 = vld [vmem:[#allocation10 + $0x28] sm:$0xff]  ;;  %v1551_v58 = vld [vmem:[#allocation10 + $0x58] sm:$0xff] }
  0xfd   :  { %2237 = vmatpush1.bf16.msra.mxu1 %v2236_v35 }
  0xfe   :  { %1255 = vmatpush1.bf16.msra.mxu0 %v2546_v62  ;;  %2239 = vmatprep.subr.bf16.mxu1 %v2238_v38  ;;  %v2254_v62 = vpack.c.bf16 %v1451_v60, %v1450_v59  ;;  %v1556_v59 = vld [vmem:[#allocation10 + $0x80] sm:$0xff] }
  0xff   :  { %1256 = vmatprep.subr.bf16.mxu0 %v2554_v1  ;;  %v1452_v1 = vld [vmem:[#allocation8 + $0xb0] sm:$0xff] }
 0x100   :  { %v2258_v4 = vpack.c.bf16 %v1453_v2, %v1452_v1  ;;  %v1566_v1 = vld [vmem:[#allocation10 + $0xd0] sm:$0xff] }
 0x101   :  { %2241 = vmatpush1.bf16.msra.mxu1 %v2240_v41 }
 0x102   :  { %1257 = vmatpush1.bf16.msra.mxu0 %v2552_v3  ;;  %2243 = vmatprep.subr.bf16.mxu1 %v2242_v44  ;;  %v2256_v3 = vpack.c.bf16 %v1435_v0, %v1434_v63  ;;  %v1442_v44 = vld [vmem:[#allocation8 + $0x60] sm:$0xff]  ;;  %v1555_v63 = vld [vmem:[#allocation10 + $0x78] sm:$0xff]  ;;  %v1561_v0 = vld [vmem:[#allocation10 + $0xa8] sm:$0xff] }
 0x103   :  { %1258 = vmatprep.subr.bf16.mxu0 %v2560_v6  ;;  %v1437_v6 = vld [vmem:[#allocation8 + $0x38] sm:$0xff]  ;;  %v2272_v46 = vpack.c.bf16 %v1443_v45, %v1442_v44  ;;  %v1616_v44 = vld [vmem:[#allocation10 + $0x260] sm:$0xff] }
 0x104   :  { %v2260_v9 = vpack.c.bf16 %v1437_v6, %v1436_v5  ;;  %v1565_v5 = vld [vmem:[#allocation10 + $0xc8] sm:$0xff]  ;;  %v1571_v6 = vld [vmem:[#allocation10 + $0xf8] sm:$0xff] }
 0x105   :  { %2245 = vmatpush1.bf16.msra.mxu1 %v2244_v47  ;;  %v1460_v47 = vld [vmem:[#allocation8 + $0xf0] sm:$0xff] }
 0x106   :  { %1259 = vmatpush1.bf16.msra.mxu0 %v2558_v7  ;;  %v1454_v7 = vld [vmem:[#allocation8 + $0xc0] sm:$0xff]  ;;  %v2274_v49 = vpack.c.bf16 %v1461_v48, %v1460_v47  ;;  %v1615_v47 = vld [vmem:[#allocation10 + $0x258] sm:$0xff] }
 0x107   :  { %1260 = vmatprep.subr.bf16.mxu0 %v2566_v10  ;;  %v2262_v10 = vpack.c.bf16 %v1455_v8, %v1454_v7  ;;  %v1576_v7 = vld [vmem:[#allocation10 + $0x120] sm:$0xff] }
 0x10a   :  { %1261 = vmatpush1.bf16.msra.mxu0 %v2564_v11  ;;  %v1438_v11 = vld [vmem:[#allocation8 + $0x40] sm:$0xff] }
 0x10b   :  { %1262 = vmatprep.subr.bf16.mxu0 %v2572_v14  ;;  %v1457_v14 = vld [vmem:[#allocation8 + $0xd8] sm:$0xff] }
 0x10c   :  { %v2266_v16 = vpack.c.bf16 %v1457_v14, %v1456_v13  ;;  %v1586_v13 = vld [vmem:[#allocation10 + $0x170] sm:$0xff] }
 0x10e   :  { %1263 = vmatpush1.bf16.msra.mxu0 %v2570_v15  ;;  %v2264_v15 = vpack.c.bf16 %v1439_v12, %v1438_v11  ;;  %v1575_v11 = vld [vmem:[#allocation10 + $0x118] sm:$0xff]  ;;  %v1581_v12 = vld [vmem:[#allocation10 + $0x148] sm:$0xff] }
 0x10f   :  { %1264 = vmatprep.subr.bf16.mxu0 %v2578_v18  ;;  %v1441_v18 = vld [vmem:[#allocation8 + $0x58] sm:$0xff] }
 0x110   :  { %v2268_v21 = vpack.c.bf16 %v1441_v18, %v1440_v17  ;;  %v1585_v17 = vld [vmem:[#allocation10 + $0x168] sm:$0xff]  ;;  %v1591_v18 = vld [vmem:[#allocation10 + $0x198] sm:$0xff] }
 0x112   :  { %1265 = vmatpush1.bf16.msra.mxu0 %v2576_v19  ;;  %v1458_v19 = vld [vmem:[#allocation8 + $0xe0] sm:$0xff] }
 0x113   :  { %1266 = vmatprep.subr.bf16.mxu0 %v2584_v22  ;;  %v2270_v22 = vpack.c.bf16 %v1459_v20, %v1458_v19  ;;  %v1596_v19 = vld [vmem:[#allocation10 + $0x1c0] sm:$0xff] }
 0x116   :  { %1267 = vmatpush1.bf16.msra.mxu0 %v2582_v23 }
 0x117   :  { %1268 = vmatprep.subr.bf16.mxu0 %v2587_v26 }
 0x11a   :  { %1269 = vmatpush1.bf16.msra.mxu0 %v2585_v27  ;;  %v408_v27 = vlaneseq }
 0x11b   :  { %2247 = vmatprep.subr.bf16.mxu0 %v2246_v51  ;;  %v1445_v51 = vld [vmem:[#allocation8 + $0x78] sm:$0xff] }
 0x11c   :  { %v2884_v28 = vshrl.u32 %v408_v27, 7  ;;  %v2276_v52 = vpack.c.bf16 %v1445_v51, %v1444_v50  ;;  %v1548_v50 = vld [vmem:[#allocation10 + $0x40] sm:$0xff] }
 0x11d   :  { %1271 = vmatmul.mubr.bf16.vlgmr.msra.gmra.mrb[0].mxu0 %v465_v29 }
 0x11e   :  { %2249 = vmatpush3.bf16.msra.mxu0 %v2248_v55  ;;  %v2887_v29 = vsub.s32 0, %v2884_v28  ;;  %v2893_v31 = vsub.s32 1, %v2884_v28  ;;  %v1540_v55 = vld [vmem:[#allocation10] sm:$0xff] }
 0x11f   :  { %2251 = vmatprep.subr.bf16.mxu0 %v2250_v56  ;;  %v2278_v56 = vpack.c.bf16 %v1546_v54, %v1541_v53  ;;  %v2280_v60 = vpack.c.bf16 %v1545_v57, %v1540_v55  ;;  %v2093_v54 = vld [vmem:[%s2950_s6] ss:$0 sm:$0xff]  ;;  %v1542_v57 = vld [vmem:[#allocation10 + $0x10] sm:$0xff] }
 0x120   :  { %v411_v32 = vrot.slane %v406_v30, %v2887_v29  ;;  %v415_v33 = vrot.slane %v406_v30, %v2893_v31  ;;  %v1345_v30 = vld [vmem:[%s2948_s4] sm:$0x3] }
 0x121   :  { %2279 = vmatprep.subr.bf16.mxu1 %v2278_v56 }
 0x122   :  { %2253 = vmatpush3.bf16.msra.mxu0 %v2252_v61  ;;  %v2282_v61 = vpack.c.bf16 %v1556_v59, %v1551_v58  ;;  %v1547_v58 = vld [vmem:[#allocation10 + $0x38] sm:$0xff]  ;;  %v1553_v59 = vld [vmem:[#allocation10 + $0x68] sm:$0xff] }
 0x123   :  { %2255 = vmatprep.subr.bf16.mxu0 %v2254_v62  ;;  %v1550_v62 = vld [vmem:[#allocation10 + $0x50] sm:$0xff] }
 0x124   :  { %v2284_v2 = vpack.c.bf16 %v1555_v63, %v1550_v62  ;;  %v2312_v62 = vpack.c.bf16 %v1547_v58, %v1542_v57  ;;  %v1584_v57 = vld [vmem:[#allocation10 + $0x160] sm:$0xff]  ;;  %v1589_v58 = vld [vmem:[#allocation10 + $0x188] sm:$0xff] }
 0x126   :  { %2257 = vmatpush3.bf16.msra.mxu0 %v2256_v3  ;;  %v2286_v3 = vpack.c.bf16 %v1566_v1, %v1561_v0  ;;  %v1552_v1 = vld [vmem:[#allocation10 + $0x60] sm:$0xff] }
 0x127   :  { %2259 = vmatprep.subr.bf16.mxu0 %v2258_v4  ;;  %v1560_v4 = vld [vmem:[#allocation10 + $0xa0] sm:$0xff] }
 0x128   :  { %v2288_v8 = vpack.c.bf16 %v1565_v5, %v1560_v4  ;;  %v1568_v4 = vld [vmem:[#allocation10 + $0xe0] sm:$0xff] }
 0x12a   :  { %2261 = vmatpush3.bf16.msra.mxu0 %v2260_v9  ;;  %v2290_v9 = vpack.c.bf16 %v1576_v7, %v1571_v6  ;;  %v1562_v7 = vld [vmem:[#allocation10 + $0xb0] sm:$0xff] }
 0x12b   :  { %2263 = vmatprep.subr.bf16.mxu0 %v2262_v10  ;;  %v1570_v10 = vld [vmem:[#allocation10 + $0xf0] sm:$0xff] }
 0x12c   :  { %v2292_v14 = vpack.c.bf16 %v1575_v11, %v1570_v10  ;;  %v1578_v10 = vld [vmem:[#allocation10 + $0x130] sm:$0xff] }
 0x12e   :  { %2265 = vmatpush3.bf16.msra.mxu0 %v2264_v15  ;;  %v2294_v15 = vpack.c.bf16 %v1586_v13, %v1581_v12  ;;  %v1572_v13 = vld [vmem:[#allocation10 + $0x100] sm:$0xff] }
 0x12f   :  { %2267 = vmatprep.subr.bf16.mxu0 %v2266_v16  ;;  %v1580_v16 = vld [vmem:[#allocation10 + $0x140] sm:$0xff] }
 0x130   :  { %v2296_v20 = vpack.c.bf16 %v1585_v17, %v1580_v16  ;;  %v1588_v16 = vld [vmem:[#allocation10 + $0x180] sm:$0xff] }
 0x132   :  { %2269 = vmatpush3.bf16.msra.mxu0 %v2268_v21  ;;  %v2298_v21 = vpack.c.bf16 %v1596_v19, %v1591_v18  ;;  %v1582_v19 = vld [vmem:[#allocation10 + $0x150] sm:$0xff] }
 0x133   :  { %2271 = vmatprep.subr.bf16.mxu0 %v2270_v22  ;;  %v1590_v22 = vld [vmem:[#allocation10 + $0x190] sm:$0xff] }
 0x136   :  { %2273 = vmatpush3.bf16.msra.mxu0 %v2272_v46  ;;  %v1610_v46 = vld [vmem:[#allocation10 + $0x230] sm:$0xff] }
 0x137   :  { %2275 = vmatprep.subr.bf16.mxu0 %v2274_v49  ;;  %v2308_v48 = vpack.c.bf16 %v1615_v47, %v1610_v46  ;;  %v1543_v49 = vld [vmem:[#allocation10 + $0x18] sm:$0xff]  ;;  %v2762_v46 = vmov 0.0|0.0   ;;  %v1554_v47 = vld [vmem:[#allocation10 + $0x70] sm:$0xff] }
 0x138   :  { %v2310_v51 = vpack.c.bf16 %v1548_v50, %v1543_v49  ;;  %v1564_v50 = vld [vmem:[#allocation10 + $0xc0] sm:$0xff] }
 0x13a   :  { %2277 = vmatpush3.bf16.msra.mxu0 %v2276_v52  ;;  %v2761_v52 = vmov 0.0  }
 0x19b   :  { %v1149_v23 = vpop.f32.mrb[0].mxu1 }
 0x19c   :  { %v1151_v24 = vpop.f32.mrb[1].mxu1  ;;  %v1150_v34 = vadd.f32 %v1149_v23, %v411_v32  ;;  %v1595_v23 = vld [vmem:[#allocation10 + $0x1b8] sm:$0xff]  ;;  %v1350_v32 = vrot.slane %v1345_v30, %v2887_v29 }
 0x19d   :  { %v1153_v25 = vpop.f32.mrb[2].mxu1  ;;  %v1152_v35 = vadd.f32 %v1151_v24, %v415_v33  ;;  %v1601_v24 = vld [vmem:[#allocation10 + $0x1e8] sm:$0xff]  ;;  %v1354_v33 = vrot.slane %v1345_v30, %v2893_v31  ;;  %v1608_v30 = vld [vmem:[#allocation10 + $0x220] sm:$0xff] }
 0x19e   :  { %v1154_v26 = vpop.f32.mrb[3].mxu1  ;;  %v1606_v25 = vld [vmem:[#allocation10 + $0x210] sm:$0xff] }
 0x19f   :  { %v2300_v26 = vpack.c.bf16 %v1595_v23, %v1590_v22  ;;  %v2302_v27 = vpack.c.bf16 %v1606_v25, %v1601_v24  ;;  %v1598_v22 = vld [vmem:[#allocation10 + $0x1d0] sm:$0xff]  ;;  %v1592_v25 = vld [vmem:[#allocation10 + $0x1a0] sm:$0xff] }
 0x1f0   :  { %v1272_v36 = vpop.f32.mrb[0].mxu0 }
 0x1f1   :  { %v2367_v37 = vadd.f32 %v1272_v36, %v1150_v34  ;;  %v1274_v38 = vpop.f32.mrb[1].mxu0 }
 0x1f2   :  { %v2369_v39 = vadd.f32 %v1274_v38, %v1152_v35  ;;  %v1276_v40 = vpop.f32.mrb[2].mxu0 }
 0x1f3   :  { %v1277_v41 = vpop.f32.mrb[3].mxu0  ;;  %v1279_v43 = vmax.f32 %v2367_v37, 0.0  ;;  %v1600_v40 = vld [vmem:[#allocation10 + $0x1e0] sm:$0xff] }
 0x1f4   :  { %v1280_v42 = vmax.f32 %v2369_v39, 0.0  ;;  %v1605_v41 = vld [vmem:[#allocation10 + $0x208] sm:$0xff] }
 0x1f6   :  { %1421 = vmatprep.mubr.f32.mxu1 %v1280_v42  ;;  %v2304_v42 = vpack.c.bf16 %v1605_v41, %v1600_v40  ;;  %v1612_v40 = vld [vmem:[#allocation10 + $0x240] sm:$0xff]  ;;  %v1617_v41 = vld [vmem:[#allocation10 + $0x268] sm:$0xff] }
 0x1f7   :  { %1422 = vmatmul.mubr.f32.vlgmr.msra.gmra.mrb[4].mxu1 %v1279_v43  ;;  %v1611_v43 = vld [vmem:[#allocation10 + $0x238] sm:$0xff] }
 0x1f8   :  { %2281 = vmatpush1.bf16.msra.mxu1 %v2280_v60  ;;  %v2306_v45 = vpack.c.bf16 %v1616_v44, %v1611_v43  ;;  %1711 = vmatprep.mubr.f32.mxu1 %v2761_v52  ;;  %v1558_v60 = vld [vmem:[#allocation10 + $0x90] sm:$0xff]  ;;  %v1544_v43 = vld [vmem:[#allocation10 + $0x20] sm:$0xff]  ;;  %v1549_v44 = vld [vmem:[#allocation10 + $0x48] sm:$0xff] }
 0x1f9   :  { %2283 = vmatprep.subr.bf16.mxu1 %v2282_v61  ;;  %v2314_v0 = vpack.c.bf16 %v1558_v60, %v1553_v59  ;;  %v2355_v59 = vpack.c.bf16 %v1589_v58, %v1584_v57  ;;  %v1594_v60 = vld [vmem:[#allocation10 + $0x1b0] sm:$0xff] }
 0x1fc   :  { %2285 = vmatpush1.bf16.msra.mxu1 %v2284_v2  ;;  %v1557_v2 = vld [vmem:[#allocation10 + $0x88] sm:$0xff] }
 0x1fd   :  { %2287 = vmatprep.subr.bf16.mxu1 %v2286_v3  ;;  %v1563_v3 = vld [vmem:[#allocation10 + $0xb8] sm:$0xff]  ;;  %v2316_v5 = vpack.c.bf16 %v1557_v2, %v1552_v1  ;;  %v1614_v2 = vld [vmem:[#allocation10 + $0x250] sm:$0xff] }
 0x1fe   :  { %v2318_v6 = vpack.c.bf16 %v1568_v4, %v1563_v3  ;;  %v1619_v3 = vld [vmem:[#allocation10 + $0x278] sm:$0xff] }
 0x1ff   :  { %v2364_v4 = vpack.c.bf16 %v1619_v3, %v1614_v2 }
 0x200   :  { %2289 = vmatpush1.bf16.msra.mxu1 %v2288_v8  ;;  %v1567_v8 = vld [vmem:[#allocation10 + $0xd8] sm:$0xff] }
 0x201   :  { %2291 = vmatprep.subr.bf16.mxu1 %v2290_v9  ;;  %v1573_v9 = vld [vmem:[#allocation10 + $0x108] sm:$0xff]  ;;  %v2320_v11 = vpack.c.bf16 %v1567_v8, %v1562_v7 }
 0x202   :  { %v2322_v12 = vpack.c.bf16 %v1578_v10, %v1573_v9 }
 0x204   :  { %2293 = vmatpush1.bf16.msra.mxu1 %v2292_v14  ;;  %v1577_v14 = vld [vmem:[#allocation10 + $0x128] sm:$0xff] }
 0x205   :  { %2295 = vmatprep.subr.bf16.mxu1 %v2294_v15  ;;  %v1583_v15 = vld [vmem:[#allocation10 + $0x158] sm:$0xff]  ;;  %v2324_v17 = vpack.c.bf16 %v1577_v14, %v1572_v13  ;;  %v1636_v14 = vsub.s32 3, %v2884_v28 }
 0x206   :  { %v2326_v18 = vpack.c.bf16 %v1588_v16, %v1583_v15 }
 0x208   :  { %2297 = vmatpush1.bf16.msra.mxu1 %v2296_v20  ;;  %v1587_v20 = vld [vmem:[#allocation10 + $0x178] sm:$0xff] }
 0x209   :  { %2299 = vmatprep.subr.bf16.mxu1 %v2298_v21  ;;  %v1593_v21 = vld [vmem:[#allocation10 + $0x1a8] sm:$0xff]  ;;  %v2328_v23 = vpack.c.bf16 %v1587_v20, %v1582_v19 }
 0x20a   :  { %v2330_v24 = vpack.c.bf16 %v1598_v22, %v1593_v21  ;;  %v1640_v21 = vsub.s32 4, %v2884_v28 }
 0x20c   :  { %2301 = vmatpush1.bf16.msra.mxu1 %v2300_v26  ;;  %v1597_v26 = vld [vmem:[#allocation10 + $0x1c8] sm:$0xff] }
 0x20d   :  { %2303 = vmatprep.subr.bf16.mxu1 %v2302_v27  ;;  %v1603_v27 = vld [vmem:[#allocation10 + $0x1f8] sm:$0xff] }
 0x210   :  { %2305 = vmatpush1.bf16.msra.mxu1 %v2304_v42  ;;  %v2340_v42 = vpack.c.bf16 %v1617_v41, %v1612_v40 }
 0x211   :  { %2307 = vmatprep.subr.bf16.mxu1 %v2306_v45  ;;  %v2343_v45 = vpack.c.bf16 %v1549_v44, %v1544_v43 }
 0x214   :  { %2309 = vmatpush1.bf16.msra.mxu1 %v2308_v48  ;;  %v1559_v48 = vld [vmem:[#allocation10 + $0x98] sm:$0xff] }
 0x215   :  { %2311 = vmatprep.subr.bf16.mxu1 %v2310_v51  ;;  %v2346_v49 = vpack.c.bf16 %v1559_v48, %v1554_v47  ;;  %v1569_v51 = vld [vmem:[#allocation10 + $0xe8] sm:$0xff] }
 0x2ca   :  { %v1423_v34 = vpop.f32.mrb[4].mxu1 }
 0x2cb   :  { %v1424_v35 = vadd.f32 %v1423_v34, %v1350_v32  ;;  %v1425_v36 = vpop.f32.mrb[5].mxu1  ;;  %v2332_v32 = vpack.c.bf16 %v1597_v26, %v1592_v25  ;;  %v1602_v34 = vld [vmem:[#allocation10 + $0x1f0] sm:$0xff] }
 0x2cc   :  { %v1426_v37 = vadd.f32 %v1425_v36, %v1354_v33  ;;  %v2334_v33 = vpack.c.bf16 %v1608_v30, %v1603_v27  ;;  %v1613_v36 = vld [vmem:[#allocation10 + $0x248] sm:$0xff] }
 0x2cd   :  { %v1428_v39 = vmax.f32 %v1424_v35, 0.0  ;;  %v1607_v35 = vld [vmem:[#allocation10 + $0x218] sm:$0xff] }
 0x2ce   :  { %v1429_v38 = vmax.f32 %v1426_v37, 0.0  ;;  %v1618_v37 = vld [vmem:[#allocation10 + $0x270] sm:$0xff] }
 0x2d0   :  { %1533 = vmatprep.mubr.f32.mxu0 %v1429_v38  ;;  %v2336_v38 = vpack.c.bf16 %v1607_v35, %v1602_v34 }
 0x2d1   :  { %1534 = vmatmul.mubr.f32.vlgmr.msra.gmra.mrb[4].mxu0 %v1428_v39  ;;  %v2338_v39 = vpack.c.bf16 %v1618_v37, %v1613_v36 }
 0x3a4   :  { %v2127_v53 = vpop.f32.mrb[4].mxu0 }
 0x3a5   :  { %v2128_v55 = vpop.f32.mrb[5].mxu0 }
 0x3a6   :  { %v2129_v56 = vadd.f32 %v2128_v55, %v2127_v53  ;;  %v2349_v53 = vpack.c.bf16 %v1569_v51, %v1564_v50  ;;  %v1579_v55 = vld [vmem:[#allocation10 + $0x138] sm:$0xff] }
 0x3a8   :  { %v1536_v61 = vadd.f32 %v2129_v56, %v2093_v54  ;;  %v1574_v54 = vld [vmem:[#allocation10 + $0x110] sm:$0xff] }
 0x3a9   :  { %v2352_v56 = vpack.c.bf16 %v1579_v55, %v1574_v54 }
 0x3aa   :  { %v2906_v63 = vmax.f32 %v1536_v61, 0.0  ;;  %v1599_v61 = vld [vmem:[#allocation10 + $0x1d8] sm:$0xff] }
 0x3ac   :  { %1712 = vmatmul.mubr.f32.vlgmr.msra.gmra.mrb[6].mxu1 %v2906_v63 }
 0x3ad   :  { %2313 = vmatpush1.bf16.msra.mxu1 %v2312_v62  ;;  %1782 = vmatprep.mubr.f32.mxu1 %v2761_v52  ;;  %v1604_v62 = vld [vmem:[#allocation10 + $0x200] sm:$0xff] }
 0x3ae   :  { %2315 = vmatprep.subr.bf16.mxu1 %v2314_v0  ;;  %v1609_v0 = vld [vmem:[#allocation10 + $0x228] sm:$0xff] }
 0x3af   :  { %v2361_v1 = vpack.c.bf16 %v1609_v0, %v1604_v62 }
 0x3b1   :  { %2317 = vmatpush1.bf16.msra.mxu1 %v2316_v5  ;;  %v1620_v5 = vld [vmem:[%s2952_s8] sm:$0x1f]  ;;  %s2765_s8 = smov [#allocation11]  }
 0x3b2   :  { %2319 = vmatprep.subr.bf16.mxu1 %v2318_v6  ;;  %v1625_v6 = vrot.slane %v1620_v5, %v2887_v29  ;;  %v1629_v7 = vrot.slane %v1620_v5, %v2893_v31  ;;  %v1637_v16 = vrot.slane %v1620_v5, %v1636_v14  ;;  %v1641_v22 = vrot.slane %v1620_v5, %v1640_v21  ;;  %s1954_s1 = sshll.u32 %s2765_s8, 4  ;;  %s1955_s1 = int_to_ptr.vmem [resolvable:$true] %s1954_s1 }
 0x3b3   :  { %s2718_s10 = scalar_lea.vmem %s1955_s1, 160  ;;  %p2723_p13 = scmp.lt.s32.totalorder %s1955_s1, %s1955_s1 }
 0x3b4   :  { %p2719_p12 = scmp.ne.s32.totalorder %s1955_s1, %s2718_s10  ;;  %p2724_p0 = scmp.lt.s32.totalorder %s2718_s10, %s2718_s10 }
 0x3b5   :  { %2321 = vmatpush1.bf16.msra.mxu1 %v2320_v11 }
 0x3b6   :  { %2323 = vmatprep.subr.bf16.mxu1 %v2322_v12  ;;  %p2725_p1 = por %p2724_p0, %p2723_p13 }
 0x3b8   :  { %p2726_p2 = pnand %p2725_p1, %p2719_p12 }
 0x3b9   :  { %2325 = vmatpush1.bf16.msra.mxu1 %v2324_v17 }
 0x3ba   :  { %2327 = vmatprep.subr.bf16.mxu1 %v2326_v18 }
 0x3bd   :  { %2329 = vmatpush1.bf16.msra.mxu1 %v2328_v23 }
 0x3be   :  { %2331 = vmatprep.subr.bf16.mxu1 %v2330_v24 }
 0x3c1   :  { %2333 = vmatpush1.bf16.msra.mxu1 %v2332_v32 }
 0x3c2   :  { %2335 = vmatprep.subr.bf16.mxu1 %v2334_v33 }
 0x3c5   :  { %2337 = vmatpush1.bf16.msra.mxu1 %v2336_v38 }
 0x3c6   :  { %2339 = vmatprep.subr.bf16.mxu1 %v2338_v39 }
 0x3c9   :  { %2341 = vmatpush1.bf16.msra.mxu1 %v2340_v42 }
 0x3ca   :  { %2342 = vmatprep.subr.bf16.mxu1 %v2762_v46 }
 0x3cc   :  { %1783 = vmatmul.mubr.f32.vlgmr.msra.gmra.mrb[8].mxu1 %v2906_v63 }
 0x3cd   :  { %2344 = vmatpush3.bf16.msra.mxu1 %v2343_v45  ;;  %2179 = vmatprep.mubr.msk.f32.mxu1 %vm2763_vm1, %v2761_v52  ;;  %v2358_v52 = vpack.c.bf16 %v1599_v61, %v1594_v60  ;;  %v2764_v60 = vmov 1983009808  }
 0x3ce   :  { %2345 = vmatprep.subr.bf16.mxu1 %v2762_v46  ;;  %v1923_v61 = vunpack.c.l.s4 %v2764_v60 }
 0x3d1   :  { %2347 = vmatpush3.bf16.msra.mxu1 %v2346_v49 }
 0x3d2   :  { %2348 = vmatprep.subr.bf16.mxu1 %v2762_v46 }
 0x3d5   :  { %2350 = vmatpush3.bf16.msra.mxu1 %v2349_v53 }
 0x3d6   :  { %2351 = vmatprep.subr.bf16.mxu1 %v2762_v46 }
 0x3d9   :  { %2353 = vmatpush3.bf16.msra.mxu1 %v2352_v56 }
 0x3da   :  { %2354 = vmatprep.subr.bf16.mxu1 %v2762_v46 }
 0x3dd   :  { %2356 = vmatpush3.bf16.msra.mxu1 %v2355_v59 }
 0x3de   :  { %2357 = vmatprep.subr.bf16.mxu1 %v2762_v46 }
 0x3e1   :  { %2359 = vmatpush3.bf16.msra.mxu1 %v2358_v52 }
 0x3e2   :  { %2360 = vmatprep.subr.bf16.mxu1 %v2762_v46 }
 0x3e5   :  { %2362 = vmatpush3.bf16.msra.mxu1 %v2361_v1  ;;  %v1924_v1 = vunpack.c.0.s8 %v1923_v61 }
 0x3e6   :  { %2363 = vmatprep.subr.bf16.mxu1 %v2762_v46 }
 0x3e9   :  { %2365 = vmatpush3.bf16.msra.mxu1 %v2364_v4 }
 0x3ec   :  { %2180 = vmatmul.mubr.f32.vlgmr.msra.gmra.mrb[10].mxu1 %v2906_v63  ;;  %v1632_v63 = vsub.s32 2, %v2884_v28 }
 0x3ee   :  { %v1633_v15 = vrot.slane %v1620_v5, %v1632_v63 }
 0x47f   :  { %v1713_v8 = vpop.f32.mrb[6].mxu1 }
 0x480   :  { %v1714_v9 = vadd.f32 %v1713_v8, %v1625_v6  ;;  %v1715_v10 = vpop.f32.mrb[7].mxu1  ;;  %v1927_v8 = vsub.s32 %v1924_v1, %v2884_v28 }
 0x481   :  { %v1716_v11 = vadd.f32 %v1715_v10, %v1629_v7 }
 0x482   :  { %v1860_v12 = vsel %vm1859_vm2, %v1714_v9, -inf }
 0x483   :  { %1861 = vmax.xlane.f32.xlu0 %v1860_v12  ;;  %v1871_v13 = vsel %vm1859_vm2, %v1716_v11, -inf }
 0x487   :  { %1872 = vmax.xlane.f32.xlu0 %v1871_v13 }
 0x49f   :  { %v1784_v29 = vpop.f32.mrb[8].mxu1 }
 0x4a0   :  { %v1785_v17 = vadd.f32 %v1784_v29, %v1633_v15  ;;  %v1786_v31 = vpop.f32.mrb[9].mxu1 }
 0x4a1   :  { %v1787_v18 = vadd.f32 %v1786_v31, %v1637_v16 }
 0x4a2   :  { %v1882_v19 = vsel %vm1859_vm2, %v1785_v17, -inf }
 0x4a3   :  { %1883 = vmax.xlane.f32.xlu1 %v1882_v19  ;;  %v1893_v20 = vsel %vm1859_vm2, %v1787_v18, -inf }
 0x4a7   :  { %1894 = vmax.xlane.f32.xlu1 %v1893_v20 }
 0x4bf   :  { %v1855_v23 = vpop.f32.mrb[10].mxu1 }
 0x4c0   :  { %v1856_v24 = vadd.f32 %v1855_v23, %v1641_v22  ;;  %v2181_v25 = vpop.f32.mrb[11].mxu1 }
 0x4c2   :  { %v1904_v26 = vsel %vm1859_vm2, %v1856_v24, -inf }
 0x4c3   :  { %1905 = vmax.xlane.f32.xlu0 %v1904_v26 }
 0x510   :  { %v1862_v27 = vpop.xlane.xlu0 %1861 }
 0x511   :  { %v1863_v30 = vsub.f32 %v1714_v9, %v1862_v27 }
 0x513   :  { %v1864_v32 = vmul.f32 1.442695, %v1863_v30 }
 0x514   :  { %v1873_v33 = vpop.xlane.xlu0 %1872 }
 0x515   :  { %2588 = vpow2.f32 %v1864_v32  ;;  %v1874_v34 = vsub.f32 %v1716_v11, %v1873_v33 }
 0x517   :  { %v1875_v35 = vmul.f32 1.442695, %v1874_v34 }
 0x519   :  { %2590 = vpow2.f32 %v1875_v35 }
 0x51f   :  { %v2589_v36 = vpop.eup %2588 }
 0x520   :  { %v1866_v37 = vsel %vm1859_vm2, %v2589_v36, 0.0 }
 0x521   :  { %1867 = vadd.xlane.f32.xlu1 %v1866_v37 }
 0x523   :  { %v2591_v38 = vpop.eup %2590 }
 0x524   :  { %v1877_v39 = vsel %vm1859_vm2, %v2591_v38, 0.0 }
 0x525   :  { %1878 = vadd.xlane.f32.xlu0 %v1877_v39 }
 0x530   :  { %v1884_v40 = vpop.xlane.xlu1 %1883 }
 0x531   :  { %v1885_v41 = vsub.f32 %v1785_v17, %v1884_v40 }
 0x533   :  { %v1886_v42 = vmul.f32 1.442695, %v1885_v41 }
 0x534   :  { %v1895_v43 = vpop.xlane.xlu1 %1894 }
 0x535   :  { %2592 = vpow2.f32 %v1886_v42  ;;  %v1896_v44 = vsub.f32 %v1787_v18, %v1895_v43 }
 0x537   :  { %v1897_v45 = vmul.f32 1.442695, %v1896_v44 }
 0x539   :  { %2594 = vpow2.f32 %v1897_v45 }
 0x53f   :  { %v2593_v46 = vpop.eup %2592 }
 0x540   :  { %v1888_v47 = vsel %vm1859_vm2, %v2593_v46, 0.0 }
 0x541   :  { %1889 = vadd.xlane.f32.xlu1 %v1888_v47 }
 0x543   :  { %v2595_v48 = vpop.eup %2594 }
 0x544   :  { %v1899_v49 = vsel %vm1859_vm2, %v2595_v48, 0.0 }
 0x545   :  { %1900 = vadd.xlane.f32.xlu0 %v1899_v49 }
 0x550   :  { %v1906_v50 = vpop.xlane.xlu0 %1905 }
 0x551   :  { %v1907_v51 = vsub.f32 %v1856_v24, %v1906_v50 }
 0x553   :  { %v1908_v53 = vmul.f32 1.442695, %v1907_v51 }
 0x555   :  { %2596 = vpow2.f32 %v1908_v53 }
 0x55f   :  { %v2597_v54 = vpop.eup %2596 }
 0x560   :  { %v1910_v55 = vsel %vm1859_vm2, %v2597_v54, 0.0 }
 0x561   :  { %1911 = vadd.xlane.f32.xlu1 %v1910_v55 }
 0x5ae   :  { %v1868_v56 = vpop.xlane.xlu1 %1867 }
 0x5b2   :  { %v1879_v57 = vpop.xlane.xlu0 %1878 }
 0x5b3   :  { %2598 = vrcp.f32 %v1879_v57 }
 0x5b4   :  { %2600 = vrcp.f32 %v1868_v56 }
 0x5bd   :  { %v2599_v52 = vpop.eup %2598 }
 0x5be   :  { %v2601_v62 = vpop.eup %2600  ;;  %v1881_v0 = vmul.f32 %v2599_v52, %v2591_v38 }
 0x5bf   :  { %v1870_v3 = vmul.f32 %v2601_v62, %v2589_v36 }
 0x5c1   :  { %v1920_v7 = vcombine.low %v1870_v3, %v1881_v0 }
 0x5c3   :  { %v1928_v10 = vrot.slane %v1920_v7, %v1927_v8 }
 0x5ce   :  { %v1890_v58 = vpop.xlane.xlu1 %1889 }
 0x5cf   :  { %2602 = vrcp.f32 %v1890_v58 }
 0x5d2   :  { %v1901_v59 = vpop.xlane.xlu0 %1900 }
 0x5d3   :  { %2604 = vrcp.f32 %v1901_v59 }
 0x5d9   :  { %v2603_v2 = vpop.eup %2602 }
 0x5da   :  { %v1892_v6 = vmul.f32 %v2603_v2, %v2593_v46 }
 0x5dd   :  { %v2605_v4 = vpop.eup %2604 }
 0x5de   :  { %v1903_v5 = vmul.f32 %v2605_v4, %v2595_v48 }
 0x5e0   :  { %v1921_v9 = vcombine.low %v1892_v6, %v1903_v5 }
 0x5e2   :  { %v1935_v11 = vrot.slane %v1921_v9, %v1927_v8 }
 0x5e4   :  { %v1936_v12 = vcombine.low %v1928_v10, %v1935_v11 }
 0x5e6   :  { %1946 = vst [vmem:[#allocation11] sm:$0xff] %v1936_v12 }
 0x5ee   :  { %v1912_v13 = vpop.xlane.xlu1 %1911 }
 0x5ef   :  { %2606 = vrcp.f32 %v1912_v13 }
 0x5f9   :  { %v2607_v63 = vpop.eup %2606 }
 0x5fa   :  { %v1914_v14 = vmul.f32 %v2607_v63, %v2597_v54 }
 0x5fc   :  { %2094 = vst.sshfl [vmem:[#allocation11 + $0x8] sm:$0x3 pattern:$0x76325410] %v1914_v14 }
 0x5fd   :  { %2729 = shalt.err (!%p2726_p2)
}
 0x5fe   :  { %s2730_s26 = scalar_lea.hbm %s2953_s9, 160 }
 0x5ff   :  { %p2731_p3 = scmp.ne.s32.totalorder %s2953_s9, %s2730_s26  ;;  %p2734_p4 = scmp.lt.u32.totalorder %s2730_s26, %s2953_s9 }
 0x601   :  { %p2736_p5 = pnand %p2734_p4, %p2731_p3 }
 0x603   :  { %2739 = shalt.err (!%p2736_p5)
}
 0x604   :  { %1957 = dma.vmem_to_hbm [thread:$0]  %s1955_s1, 160, %s2953_s9, [#allocation4]  }
 0x605   :  { %2746 = dma.done.wait [#allocation4], 160  }
 0x606   :  { %2747 = vsyncadd [#allocation4], 4294967136 }
 0x607   :  { %1961 = vsyncpa [#allocation3], 1 }
 0x608   :  { %1962 = vsyncpa [#allocation6], 1 }
 0x609   :  { %1963 = vsyncpa [#allocation9], 1 }
 0x60a   :  { %1964 = vsyncpa [#allocation4], 1 }

</bundles_post_ra>
